<compile_context>
chip_gen: v7x
topology: tpu7x:2x2x1
jax: 0.10.0
libtpu: 0.0.40
codegen_flags: <defaults>
</compile_context>

<pallas_src>
import math

import jax
import jax.numpy as jnp
from jax.experimental import pallas as pl
from jax.experimental.pallas import tpu as pltpu


def dwconv_kernel(x_ref, w_ref, b_ref, o_ref, xp_ref):
    """One (batch, channel-tile) block of the depthwise 3x3 conv.

    x_ref : (1, H, W, CT)   unpadded input block
    w_ref : (3, 3, CT)      depthwise taps, channels on the lane dim
    b_ref : (1, 1, CT)      bias
    o_ref : (1, H, W, CT)   output block
    xp_ref: (H+2, W+2, CT)  f32 VMEM scratch: zero-padded tile (halo built in-kernel)
    """
    _, H, W, C = x_ref.shape

    # Build the zero halo in VMEM (one cheap store pass; stores are not the binding slot here),
    # then write the interior.  No HBM padding round-trip.
    xp_ref[...] = jnp.zeros_like(xp_ref)
    xp_ref[1:H + 1, 1:W + 1, :] = x_ref[0].astype(xp_ref.dtype)

    # Accumulator starts from the bias (broadcasts on the first add) -> no separate bias pass.
    acc = b_ref[...].astype(jnp.float32)                                # (1, 1, C)

    # 9 shifted multiply-accumulates on the VPU (static, fully unrolled).
    # dh shifts index the untiled leading dim (free); dw shifts are sublane offsets.
    for dh in range(3):
        for dw in range(3):
            tap = w_ref[dh, dw, :].astype(jnp.float32)                  # (C,)
            win = xp_ref[dh:dh + H, dw:dw + W, :].astype(jnp.float32)   # (H, W, C)
            acc = acc + win * tap

    o_ref[0] = acc.astype(o_ref.dtype)


def _pick_channel_tile(C, H, W, itemsize):
    """Largest channel tile (multiple of 128 dividing C, capped at 512) whose per-step
    working set stays under a ~24 MiB budget — safe for v5e/v6e/v7x scoped VMEM."""
    if C % 128 != 0:
        # Full-extent escape hatch (e.g. tiny C in unit tests).  Stores are masked but the
        # whole problem is tiny in this regime; production dims (e.g. 768) take the tiled path.
        return C
    budget = 24 * 1024 * 1024
    best = 128
    for ct in range(128, min(C, 512) + 1, 128):
        if C % ct != 0:
            continue
        need = (2 * H * W * ct * itemsize          # double-buffered input blocks
                + 2 * H * W * ct * itemsize        # double-buffered output blocks
                + (H + 2) * (W + 2) * ct * 4       # f32 halo scratch
                + H * W * ct * 4)                  # f32 accumulator value
        if need <= budget:
            best = ct
    return best


def dwconv_forward(x, H, W, weight_pt, bias, *, channel_tile=None):
    """x: (B, N, C) with N == H*W.  weight_pt: PyTorch depthwise weight (C, 1, 3, 3).
    bias: (C,).  Returns (B, N, C), matching DWConv.forward semantics exactly."""
    B, N, C = x.shape
    assert N == H * W
    x_img = x.reshape(B, H, W, C)                        # NHWC view, no data shuffle
    w = jnp.transpose(weight_pt[:, 0, :, :], (1, 2, 0))  # (3, 3, C): channels on lanes (tiny)
    b = bias.reshape(1, 1, C)

    CT = channel_tile if channel_tile is not None else _pick_channel_tile(
        C, H, W, x.dtype.itemsize)
    assert C % CT == 0
    n_ct = C // CT
    # TODO(synk): add an H-tile grid axis for very large spatial extents where even CT=128
    # overflows the VMEM budget; not needed for typical transformer-block DWConv shapes.

    out = pl.pallas_call(
        dwconv_kernel,
        out_shape=jax.ShapeDtypeStruct((B, H, W, C), x.dtype),
        grid=(B, n_ct),
        in_specs=[
            pl.BlockSpec((1, H, W, CT), lambda bi, ci: (bi, 0, 0, ci)),
            pl.BlockSpec((3, 3, CT), lambda bi, ci: (0, 0, ci)),
            pl.BlockSpec((1, 1, CT), lambda bi, ci: (0, 0, ci)),
        ],
        out_specs=pl.BlockSpec((1, H, W, CT), lambda bi, ci: (bi, 0, 0, ci)),
        scratch_shapes=[pltpu.VMEM((H + 2, W + 2, CT), jnp.float32)],
        compiler_params=pltpu.CompilerParams(
            dimension_semantics=("parallel", "parallel"),
            vmem_limit_bytes=32 * 1024 * 1024,
        ),
    )(x_img, w, b)

    return out.reshape(B, N, C)


def dwconv_reference(x, H, W, weight_pt, bias):
    """Pure-JAX reference mirroring torch's grouped conv (NCHW)."""
    B, N, C = x.shape
    x_nchw = jnp.transpose(x, (0, 2, 1)).reshape(B, C, H, W)
    out = jax.lax.conv_general_dilated(
        x_nchw, weight_pt,
        window_strides=(1, 1), padding=((1, 1), (1, 1)),
        dimension_numbers=("NCHW", "OIHW", "NCHW"),
        feature_group_count=C,
    ) + bias[None, :, None, None]
    return jnp.transpose(out.reshape(B, C, H * W), (0, 2, 1))


if __name__ == "__main__":
    key = jax.random.PRNGKey(0)

    def make_params(k, C):
        kw, kb = jax.random.split(k)
        fan_in = 1 * 3 * 3  # in_channels/groups * kH * kW (torch Conv2d default init scale)
        bound = 1.0 / math.sqrt(fan_in)
        w = jax.random.uniform(kw, (C, 1, 3, 3), jnp.float32, -bound, bound)
        b = jax.random.uniform(kb, (C,), jnp.float32, -bound, bound)
        return w, b

    # Test 1: small shapes consistent with the module (B=2, dim=4, H=W=16 -> N=256).
    B, C, H, W = 2, 4, 16, 16
    k1, k2, k3 = jax.random.split(key, 3)
    x = jax.random.normal(k1, (B, H * W, C), dtype=jnp.float32)
    w_pt, bias = make_params(k2, C)

    out = jax.block_until_ready(dwconv_forward(x, H, W, w_pt, bias))
    ref = dwconv_reference(x, H, W, w_pt, bias)
    assert out.shape == (B, H * W, C)
    assert jnp.allclose(out, ref, atol=1e-5, rtol=1e-5), "mismatch vs reference (test 1)"

    # Test 2: exercise the lane-dense channel-tiled path (C multiple of 128, n_ct > 1).
    B2, C2, H2, W2 = 1, 256, 8, 8
    x2 = jax.random.normal(k3, (B2, H2 * W2, C2), dtype=jnp.float32)
    w2, b2 = make_params(jax.random.fold_in(key, 7), C2)

    out2 = jax.block_until_ready(dwconv_forward(x2, H2, W2, w2, b2, channel_tile=128))
    ref2 = dwconv_reference(x2, H2, W2, w2, b2)
    assert jnp.allclose(out2, ref2, atol=1e-5, rtol=1e-5), "mismatch vs reference (test 2)"

    print("KERNEL_OK")
</pallas_src>

<mosaic_0001>
module attributes {stable_mosaic.version = 11 : i64} {
  func.func @dwconv_kernel(%arg0: i32, %arg1: i32, %arg2: memref<1x16x16x4xf32, #tpu.memory_space<vmem>>, %arg3: memref<3x3x4xf32, #tpu.memory_space<vmem>>, %arg4: memref<1x1x4xf32, #tpu.memory_space<vmem>>, %arg5: memref<1x16x16x4xf32, #tpu.memory_space<vmem>>, %arg6: memref<18x18x4xf32, #tpu.memory_space<vmem>>) attributes {dimension_semantics = [#tpu.dimension_semantics<parallel>, #tpu.dimension_semantics<parallel>], iteration_bounds = array<i64: 2, 1>, scalar_prefetch = 0 : i64, scratch_operands = 1 : i64, tpu.core_type = #tpu.core_type<tc>, window_params = [{transform_indices = @transform_0, window_bounds = array<i64: 1, 16, 16, 4>}, {transform_indices = @transform_1, window_bounds = array<i64: 3, 3, 4>}, {transform_indices = @transform_2, window_bounds = array<i64: 1, 1, 4>}, {transform_indices = @transform_3, window_bounds = array<i64: 1, 16, 16, 4>}]} {
    %cst = arith.constant 0.000000e+00 : f32
    %0 = vector.broadcast %cst : f32 to vector<18x18x4xf32>
    %c0 = arith.constant 0 : index
    %c0_0 = arith.constant 0 : index
    %c0_1 = arith.constant 0 : index
    %1 = vector.load %arg6[%c0, %c0_0, %c0_1] : memref<18x18x4xf32, #tpu.memory_space<vmem>>, vector<18x18x4xf32>
    tpu.vector_store %arg6[%c0, %c0_0, %c0_1], %0 {strides = array<i32>} : memref<18x18x4xf32, #tpu.memory_space<vmem>>, vector<18x18x4xf32>,
    %c0_2 = arith.constant 0 : index
    %c0_3 = arith.constant 0 : index
    %c0_4 = arith.constant 0 : index
    %c0_5 = arith.constant 0 : index
    %2 = vector.load %arg2[%c0_2, %c0_3, %c0_4, %c0_5] : memref<1x16x16x4xf32, #tpu.memory_space<vmem>>, vector<1x16x16x4xf32>
    %3 = vector.shape_cast %2 : vector<1x16x16x4xf32> to vector<16x16x4xf32>
    %c1 = arith.constant 1 : index
    %c1_6 = arith.constant 1 : index
    %c0_7 = arith.constant 0 : index
    %4 = vector.load %arg6[%c1, %c1_6, %c0_7] : memref<18x18x4xf32, #tpu.memory_space<vmem>>, vector<16x16x4xf32>
    tpu.vector_store %arg6[%c1, %c1_6, %c0_7], %3 {strides = array<i32>} : memref<18x18x4xf32, #tpu.memory_space<vmem>>, vector<16x16x4xf32>,
    %c0_8 = arith.constant 0 : index
    %c0_9 = arith.constant 0 : index
    %c0_10 = arith.constant 0 : index
    %5 = vector.load %arg4[%c0_8, %c0_9, %c0_10] : memref<1x1x4xf32, #tpu.memory_space<vmem>>, vector<1x1x4xf32>
    %c0_11 = arith.constant 0 : index
    %c0_12 = arith.constant 0 : index
    %c0_13 = arith.constant 0 : index
    %6 = vector.load %arg3[%c0_11, %c0_12, %c0_13] : memref<3x3x4xf32, #tpu.memory_space<vmem>>, vector<1x1x4xf32>
    %7 = vector.shape_cast %6 : vector<1x1x4xf32> to vector<4xf32>
    %c0_14 = arith.constant 0 : index
    %c0_15 = arith.constant 0 : index
    %c0_16 = arith.constant 0 : index
    %8 = vector.load %arg6[%c0_14, %c0_15, %c0_16] : memref<18x18x4xf32, #tpu.memory_space<vmem>>, vector<16x16x4xf32>
    %9 = vector.shape_cast %7 : vector<4xf32> to vector<1x1x4xf32>
    %10 = vector.broadcast %9 : vector<1x1x4xf32> to vector<16x16x4xf32>
    %11 = arith.mulf %8, %10 : vector<16x16x4xf32>
    %12 = vector.broadcast %5 : vector<1x1x4xf32> to vector<16x16x4xf32>
    %13 = arith.addf %12, %11 : vector<16x16x4xf32>
    %c0_17 = arith.constant 0 : index
    %c1_18 = arith.constant 1 : index
    %c0_19 = arith.constant 0 : index
    %14 = vector.load %arg3[%c0_17, %c1_18, %c0_19] : memref<3x3x4xf32, #tpu.memory_space<vmem>>, vector<1x1x4xf32>
    %15 = vector.shape_cast %14 : vector<1x1x4xf32> to vector<4xf32>
    %c0_20 = arith.constant 0 : index
    %c1_21 = arith.constant 1 : index
    %c0_22 = arith.constant 0 : index
    %16 = vector.load %arg6[%c0_20, %c1_21, %c0_22] : memref<18x18x4xf32, #tpu.memory_space<vmem>>, vector<16x16x4xf32>
    %17 = vector.shape_cast %15 : vector<4xf32> to vector<1x1x4xf32>
    %18 = vector.broadcast %17 : vector<1x1x4xf32> to vector<16x16x4xf32>
    %19 = arith.mulf %16, %18 : vector<16x16x4xf32>
    %20 = arith.addf %13, %19 : vector<16x16x4xf32>
    %c0_23 = arith.constant 0 : index
    %c2 = arith.constant 2 : index
    %c0_24 = arith.constant 0 : index
    %21 = vector.load %arg3[%c0_23, %c2, %c0_24] : memref<3x3x4xf32, #tpu.memory_space<vmem>>, vector<1x1x4xf32>
    %22 = vector.shape_cast %21 : vector<1x1x4xf32> to vector<4xf32>
    %c0_25 = arith.constant 0 : index
    %c2_26 = arith.constant 2 : index
    %c0_27 = arith.constant 0 : index
    %23 = vector.load %arg6[%c0_25, %c2_26, %c0_27] : memref<18x18x4xf32, #tpu.memory_space<vmem>>, vector<16x16x4xf32>
    %24 = vector.shape_cast %22 : vector<4xf32> to vector<1x1x4xf32>
    %25 = vector.broadcast %24 : vector<1x1x4xf32> to vector<16x16x4xf32>
    %26 = arith.mulf %23, %25 : vector<16x16x4xf32>
    %27 = arith.addf %20, %26 : vector<16x16x4xf32>
    %c1_28 = arith.constant 1 : index
    %c0_29 = arith.constant 0 : index
    %c0_30 = arith.constant 0 : index
    %28 = vector.load %arg3[%c1_28, %c0_29, %c0_30] : memref<3x3x4xf32, #tpu.memory_space<vmem>>, vector<1x1x4xf32>
    %29 = vector.shape_cast %28 : vector<1x1x4xf32> to vector<4xf32>
    %c1_31 = arith.constant 1 : index
    %c0_32 = arith.constant 0 : index
    %c0_33 = arith.constant 0 : index
    %30 = vector.load %arg6[%c1_31, %c0_32, %c0_33] : memref<18x18x4xf32, #tpu.memory_space<vmem>>, vector<16x16x4xf32>
    %31 = vector.shape_cast %29 : vector<4xf32> to vector<1x1x4xf32>
    %32 = vector.broadcast %31 : vector<1x1x4xf32> to vector<16x16x4xf32>
    %33 = arith.mulf %30, %32 : vector<16x16x4xf32>
    %34 = arith.addf %27, %33 : vector<16x16x4xf32>
    %c1_34 = arith.constant 1 : index
    %c1_35 = arith.constant 1 : index
    %c0_36 = arith.constant 0 : index
    %35 = vector.load %arg3[%c1_34, %c1_35, %c0_36] : memref<3x3x4xf32, #tpu.memory_space<vmem>>, vector<1x1x4xf32>
    %36 = vector.shape_cast %35 : vector<1x1x4xf32> to vector<4xf32>
    %c1_37 = arith.constant 1 : index
    %c1_38 = arith.constant 1 : index
    %c0_39 = arith.constant 0 : index
    %37 = vector.load %arg6[%c1_37, %c1_38, %c0_39] : memref<18x18x4xf32, #tpu.memory_space<vmem>>, vector<16x16x4xf32>
    %38 = vector.shape_cast %36 : vector<4xf32> to vector<1x1x4xf32>
    %39 = vector.broadcast %38 : vector<1x1x4xf32> to vector<16x16x4xf32>
    %40 = arith.mulf %37, %39 : vector<16x16x4xf32>
    %41 = arith.addf %34, %40 : vector<16x16x4xf32>
    %c1_40 = arith.constant 1 : index
    %c2_41 = arith.constant 2 : index
    %c0_42 = arith.constant 0 : index
    %42 = vector.load %arg3[%c1_40, %c2_41, %c0_42] : memref<3x3x4xf32, #tpu.memory_space<vmem>>, vector<1x1x4xf32>
    %43 = vector.shape_cast %42 : vector<1x1x4xf32> to vector<4xf32>
    %c1_43 = arith.constant 1 : index
    %c2_44 = arith.constant 2 : index
    %c0_45 = arith.constant 0 : index
    %44 = vector.load %arg6[%c1_43, %c2_44, %c0_45] : memref<18x18x4xf32, #tpu.memory_space<vmem>>, vector<16x16x4xf32>
    %45 = vector.shape_cast %43 : vector<4xf32> to vector<1x1x4xf32>
    %46 = vector.broadcast %45 : vector<1x1x4xf32> to vector<16x16x4xf32>
    %47 = arith.mulf %44, %46 : vector<16x16x4xf32>
    %48 = arith.addf %41, %47 : vector<16x16x4xf32>
    %c2_46 = arith.constant 2 : index
    %c0_47 = arith.constant 0 : index
    %c0_48 = arith.constant 0 : index
    %49 = vector.load %arg3[%c2_46, %c0_47, %c0_48] : memref<3x3x4xf32, #tpu.memory_space<vmem>>, vector<1x1x4xf32>
    %50 = vector.shape_cast %49 : vector<1x1x4xf32> to vector<4xf32>
    %c2_49 = arith.constant 2 : index
    %c0_50 = arith.constant 0 : index
    %c0_51 = arith.constant 0 : index
    %51 = vector.load %arg6[%c2_49, %c0_50, %c0_51] : memref<18x18x4xf32, #tpu.memory_space<vmem>>, vector<16x16x4xf32>
    %52 = vector.shape_cast %50 : vector<4xf32> to vector<1x1x4xf32>
    %53 = vector.broadcast %52 : vector<1x1x4xf32> to vector<16x16x4xf32>
    %54 = arith.mulf %51, %53 : vector<16x16x4xf32>
    %55 = arith.addf %48, %54 : vector<16x16x4xf32>
    %c2_52 = arith.constant 2 : index
    %c1_53 = arith.constant 1 : index
    %c0_54 = arith.constant 0 : index
    %56 = vector.load %arg3[%c2_52, %c1_53, %c0_54] : memref<3x3x4xf32, #tpu.memory_space<vmem>>, vector<1x1x4xf32>
    %57 = vector.shape_cast %56 : vector<1x1x4xf32> to vector<4xf32>
    %c2_55 = arith.constant 2 : index
    %c1_56 = arith.constant 1 : index
    %c0_57 = arith.constant 0 : index
    %58 = vector.load %arg6[%c2_55, %c1_56, %c0_57] : memref<18x18x4xf32, #tpu.memory_space<vmem>>, vector<16x16x4xf32>
    %59 = vector.shape_cast %57 : vector<4xf32> to vector<1x1x4xf32>
    %60 = vector.broadcast %59 : vector<1x1x4xf32> to vector<16x16x4xf32>
    %61 = arith.mulf %58, %60 : vector<16x16x4xf32>
    %62 = arith.addf %55, %61 : vector<16x16x4xf32>
    %c2_58 = arith.constant 2 : index
    %c2_59 = arith.constant 2 : index
    %c0_60 = arith.constant 0 : index
    %63 = vector.load %arg3[%c2_58, %c2_59, %c0_60] : memref<3x3x4xf32, #tpu.memory_space<vmem>>, vector<1x1x4xf32>
    %64 = vector.shape_cast %63 : vector<1x1x4xf32> to vector<4xf32>
    %c2_61 = arith.constant 2 : index
    %c2_62 = arith.constant 2 : index
    %c0_63 = arith.constant 0 : index
    %65 = vector.load %arg6[%c2_61, %c2_62, %c0_63] : memref<18x18x4xf32, #tpu.memory_space<vmem>>, vector<16x16x4xf32>
    %66 = vector.shape_cast %64 : vector<4xf32> to vector<1x1x4xf32>
    %67 = vector.broadcast %66 : vector<1x1x4xf32> to vector<16x16x4xf32>
    %68 = arith.mulf %65, %67 : vector<16x16x4xf32>
    %69 = arith.addf %62, %68 : vector<16x16x4xf32>
    %c0_64 = arith.constant 0 : index
    %c0_65 = arith.constant 0 : index
    %c0_66 = arith.constant 0 : index
    %c0_67 = arith.constant 0 : index
    %70 = vector.load %arg5[%c0_64, %c0_65, %c0_66, %c0_67] : memref<1x16x16x4xf32, #tpu.memory_space<vmem>>, vector<1x16x16x4xf32>
    %71 = vector.shape_cast %70 : vector<1x16x16x4xf32> to vector<16x16x4xf32>
    %72 = vector.shape_cast %69 : vector<16x16x4xf32> to vector<1x16x16x4xf32>
    tpu.vector_store %arg5[%c0_64, %c0_65, %c0_66, %c0_67], %72 {strides = array<i32>} : memref<1x16x16x4xf32, #tpu.memory_space<vmem>>, vector<1x16x16x4xf32>,
    return
  }
  func.func @transform_0(%arg0: i32, %arg1: i32) -> (i32, i32, i32, i32) {
    %c0_i32 = arith.constant 0 : i32
    %c0_i32_0 = arith.constant 0 : i32
    %c0_i32_1 = arith.constant 0 : i32
    return %arg0, %c0_i32, %c0_i32_0, %arg1 : i32, i32, i32, i32
  }
  func.func @transform_1(%arg0: i32, %arg1: i32) -> (i32, i32, i32) {
    %c0_i32 = arith.constant 0 : i32
    %c0_i32_0 = arith.constant 0 : i32
    %c0_i32_1 = arith.constant 0 : i32
    return %c0_i32, %c0_i32_0, %arg1 : i32, i32, i32
  }
  func.func @transform_2(%arg0: i32, %arg1: i32) -> (i32, i32, i32) {
    %c0_i32 = arith.constant 0 : i32
    %c0_i32_0 = arith.constant 0 : i32
    %c0_i32_1 = arith.constant 0 : i32
    return %c0_i32, %c0_i32_0, %arg1 : i32, i32, i32
  }
  func.func @transform_3(%arg0: i32, %arg1: i32) -> (i32, i32, i32, i32) {
    %c0_i32 = arith.constant 0 : i32
    %c0_i32_0 = arith.constant 0 : i32
    %c0_i32_1 = arith.constant 0 : i32
    return %arg0, %c0_i32, %c0_i32_0, %arg1 : i32, i32, i32, i32
  }
}

</mosaic_0001>

<bundles_post_ra>
// kernel: tpu_custom_call.1
= control target key start
LH: loop header
LB: loop body
LE: loop exit
PB: predicated region body
PF: predicated region fallthrough
CT: control target
= control target key end

     0   :  { %s1527_s12 = smov 0   ;;  %s1529_s13 = smov 0   ;;  %s2319_s0 = inlined_call_operand.vmem [shape: f32[2,16,16,4], index: 0, kind: input, shape index: {}]   ;;  %s2320_s1 = inlined_call_operand.vmem [shape: f32[3,3,4], index: 1, kind: input, shape index: {}]   ;;  %s2321_s2 = inlined_call_operand.vmem [shape: f32[1,1,4], index: 2, kind: input, shape index: {}]   ;;  %s2322_s3 = inlined_call_operand.vmem [shape: f32[2,16,16,4], index: 3, kind: output, shape index: {}]  }
   0x1   :  { %s1531_s14 = smov 0  }
   0x2 LB: > { %s25_s15 = sadd.s32 1, %s1500_s13  ;;  %p1422_p0 = scmp.ge.s32.totalorder %s1504_s14, 1  ;;  %s1504_s14 = sphi %s1531_s14, %s13_s14   ;;  %s1500_s13 = sphi %s1529_s13, %s2324_s13   ;;  %s1496_s12 = sphi %s1527_s12, %s2323_s12  }
   0x3   : > { %p27_p1 = scmp.ge.s32.totalorder %s25_s15, 2  ;;  %p173_p2 = scmp.lt.s32.totalorder %s1504_s14, 3 }
   0x5   : > { %s2326_s15 = smov (%p27_p1, %s25_s15), 0  ;;  %p174_p3 = pnand %p1422_p0, %p173_p2 }
   0x6   : > { %vm233_vm0 = vcmask (!%p174_p3), 31744   ;;  %vm236_vm1 = vcmask (!%p174_p3), 25600   ;;  %p210_p4 = scmp.lt.s32.totalorder (!%p174_p3), %s1496_s12, 1  ;;  %v1506_v0 = vmov (!%p174_p3), 0.0   ;;  %v1657_v22 = vld [vmem:[%s2320_s1] ss:$0 sm:$0xff] (!%p174_p3) }
   0x7   : > { %177 = sbr.rel (%p174_p3) target bundleno = 195 (0xc3), region = 32  ;;  %234 = vst.msk [vmem:[#allocation2] sm:$0xff] (!%p174_p3), %vm233_vm0, %v1506_v0  ;;  %235 = vst.msk [vmem:[#allocation2 + $0x8] sm:$0xff] (!%p174_p3), %vm233_vm0, %v1506_v0  ;;  %v1668_v26 = vld [vmem:[%s2320_s1 + $0x1] ss:$0 sm:$0xff] (!%p174_p3) }
   0x8   : > { %238 = vst.msk [vmem:[#allocation2 + $0x18] sm:$0xff] (!%p174_p3), %vm233_vm0, %v1506_v0  ;;  %239 = vst.msk [vmem:[#allocation2 + $0x20] sm:$0xff] (!%p174_p3), %vm233_vm0, %v1506_v0  ;;  %v1679_v30 = vld [vmem:[%s2321_s2] ss:$0 sm:$0xff] (!%p174_p3)  ;;  %v1684_v31 = vld [vmem:[%s2320_s1 + $0x2] ss:$0 sm:$0xff] (!%p174_p3) }
   0x9   : > { %241 = vst.msk [vmem:[#allocation2 + $0x30] sm:$0xff] (!%p174_p3), %vm233_vm0, %v1506_v0  ;;  %242 = vst.msk [vmem:[#allocation2 + $0x38] sm:$0xff] (!%p174_p3), %vm233_vm0, %v1506_v0  ;;  %v1704_v43 = vld [vmem:[%s2320_s1 + $0x4] ss:$0 sm:$0xff] (!%p174_p3)  ;;  %v1709_v44 = vld [vmem:[%s2320_s1 + $0x5] ss:$0 sm:$0xff] (!%p174_p3) }
   0xa   : > { %244 = vst.msk [vmem:[#allocation2 + $0x48] sm:$0xff] (!%p174_p3), %vm233_vm0, %v1506_v0  ;;  %245 = vst.msk [vmem:[#allocation2 + $0x50] sm:$0xff] (!%p174_p3), %vm233_vm0, %v1506_v0  ;;  %v1714_v45 = vld [vmem:[%s2320_s1 + $0x6] ss:$0 sm:$0xff] (!%p174_p3)  ;;  %v1722_v50 = vld [vmem:[%s2320_s1 + $0x8] ss:$0 sm:$0xff] (!%p174_p3) }
   0xb   : > { %247 = vst.msk [vmem:[#allocation2 + $0x60] sm:$0xff] (!%p174_p3), %vm233_vm0, %v1506_v0  ;;  %248 = vst.msk [vmem:[#allocation2 + $0x68] sm:$0xff] (!%p174_p3), %vm233_vm0, %v1506_v0  ;;  %v1727_v51 = vld [vmem:[%s2320_s1 + $0x9] ss:$0 sm:$0xff] (!%p174_p3) }
   0xc   : > { %250 = vst.msk [vmem:[#allocation2 + $0x78] sm:$0xff] (!%p174_p3), %vm233_vm0, %v1506_v0  ;;  %251 = vst.msk [vmem:[#allocation2 + $0x80] sm:$0xff] (!%p174_p3), %vm233_vm0, %v1506_v0 }
   0xd   : > { %253 = vst.msk [vmem:[#allocation2 + $0x90] sm:$0xff] (!%p174_p3), %vm233_vm0, %v1506_v0  ;;  %254 = vst.msk [vmem:[#allocation2 + $0x98] sm:$0xff] (!%p174_p3), %vm233_vm0, %v1506_v0 }
   0xe   : > { %256 = vst.msk [vmem:[#allocation2 + $0xa8] sm:$0xff] %vm233_vm0, %v1506_v0  ;;  %257 = vst.msk [vmem:[#allocation2 + $0xb0] sm:$0xff] %vm233_vm0, %v1506_v0  ;;  %s2328_s12 = smov (!%p210_p4, %s1496_s12), 1  ;;  %v356_v37 = vld [vmem:[#allocation2] sm:$0xff]  ;;  %v357_v52 = vld [vmem:[#allocation2 + $0x8] sm:$0xff] }
   0xf   : > { %259 = vst.msk [vmem:[#allocation2 + $0xc0] sm:$0xff] %vm233_vm0, %v1506_v0  ;;  %260 = vst.msk [vmem:[#allocation2 + $0xc8] sm:$0xff] %vm233_vm0, %v1506_v0  ;;  %s1445_s16 = sshll.u32 %s2328_s12, 8  ;;  %v392_v38 = vmul.f32 %v1657_v22, %v356_v37  ;;  %v463_v39 = vld [vmem:[#allocation2 + $0x1] sm:$0xff]  ;;  %v393_v54 = vmul.f32 %v1657_v22, %v357_v52 }
  0x10   : > { %262 = vst.msk [vmem:[#allocation2 + $0xd8] sm:$0xff] %vm233_vm0, %v1506_v0  ;;  %263 = vst.msk [vmem:[#allocation2 + $0xe0] sm:$0xff] %vm233_vm0, %v1506_v0  ;;  %s1613_s19 = scalar_lea.vmem %s2319_s0, %s1445_s16  ;;  %v564_v40 = vld [vmem:[#allocation2 + $0x2] sm:$0xff]  ;;  %v499_v42 = vmul.f32 %v1668_v26, %v463_v39  ;;  %s1789_s20 = scalar_lea.vmem %s2322_s3, %s1445_s16 }
  0x11   : > { %265 = vst.msk [vmem:[#allocation2 + $0xf0] sm:$0xff] %vm233_vm0, %v1506_v0  ;;  %266 = vst.msk [vmem:[#allocation2 + $0xf8] sm:$0xff] %vm233_vm0, %v1506_v0  ;;  %v289_v1 = vld [vmem:[%s1613_s19] sm:$0xff]  ;;  %v290_v2 = vld [vmem:[%s1613_s19 + $0x8] sm:$0xff]  ;;  %v430_v47 = vadd.f32 %v1679_v30, %v392_v38  ;;  %v600_v48 = vmul.f32 %v1684_v31, %v564_v40 }
  0x12   : > { %268 = vst.msk [vmem:[#allocation2 + $0x108] sm:$0xff] %vm233_vm0, %v1506_v0  ;;  %269 = vst.msk [vmem:[#allocation2 + $0x110] sm:$0xff] %vm233_vm0, %v1506_v0  ;;  %v291_v3 = vld [vmem:[%s1613_s19 + $0x10] sm:$0xff]  ;;  %v292_v4 = vld [vmem:[%s1613_s19 + $0x18] sm:$0xff] }
  0x13   : > { %271 = vst.msk [vmem:[#allocation2 + $0x120] sm:$0xff] %vm233_vm0, %v1506_v0  ;;  %272 = vst.msk [vmem:[#allocation2 + $0x128] sm:$0xff] %vm233_vm0, %v1506_v0  ;;  %v293_v5 = vld [vmem:[%s1613_s19 + $0x20] sm:$0xff]  ;;  %v294_v6 = vld [vmem:[%s1613_s19 + $0x28] sm:$0xff]  ;;  %v531_v57 = vadd.f32 %v499_v42, %v430_v47 }
  0x14   : > { %274 = vst.msk [vmem:[#allocation2 + $0x138] sm:$0xff] %vm233_vm0, %v1506_v0  ;;  %275 = vst.msk [vmem:[#allocation2 + $0x140] sm:$0xff] %vm233_vm0, %v1506_v0  ;;  %v295_v7 = vld [vmem:[%s1613_s19 + $0x30] sm:$0xff]  ;;  %v296_v8 = vld [vmem:[%s1613_s19 + $0x38] sm:$0xff] }
  0x15   : > { %277 = vst.msk [vmem:[#allocation2 + $0x150] sm:$0xff] %vm233_vm0, %v1506_v0  ;;  %278 = vst.msk [vmem:[#allocation2 + $0x158] sm:$0xff] %vm233_vm0, %v1506_v0  ;;  %v297_v9 = vld [vmem:[%s1613_s19 + $0x40] sm:$0xff]  ;;  %v298_v10 = vld [vmem:[%s1613_s19 + $0x48] sm:$0xff] }
  0x16   : > { %280 = vst.msk [vmem:[#allocation2 + $0x168] sm:$0xff] %vm233_vm0, %v1506_v0  ;;  %281 = vst.msk [vmem:[#allocation2 + $0x170] sm:$0xff] %vm233_vm0, %v1506_v0  ;;  %v299_v11 = vld [vmem:[%s1613_s19 + $0x50] sm:$0xff]  ;;  %v300_v12 = vld [vmem:[%s1613_s19 + $0x58] sm:$0xff] }
  0x17   : > { %283 = vst.msk [vmem:[#allocation2 + $0x180] sm:$0xff] %vm233_vm0, %v1506_v0  ;;  %284 = vst.msk [vmem:[#allocation2 + $0x188] sm:$0xff] %vm233_vm0, %v1506_v0  ;;  %v301_v13 = vld [vmem:[%s1613_s19 + $0x60] sm:$0xff]  ;;  %v302_v14 = vld [vmem:[%s1613_s19 + $0x68] sm:$0xff] }
  0x18   : > { %286 = vst.msk [vmem:[#allocation2 + $0x198] sm:$0xff] %vm233_vm0, %v1506_v0  ;;  %287 = vst.msk [vmem:[#allocation2 + $0x1a0] sm:$0xff] %vm233_vm0, %v1506_v0  ;;  %v303_v15 = vld [vmem:[%s1613_s19 + $0x70] sm:$0xff]  ;;  %v304_v16 = vld [vmem:[%s1613_s19 + $0x78] sm:$0xff] }
  0x19   : > { %237 = vst.msk [vmem:[#allocation2 + $0x10] sm:$0x3] %vm236_vm1, %v1506_v0  ;;  %240 = vst.msk [vmem:[#allocation2 + $0x28] sm:$0x3] %vm236_vm1, %v1506_v0  ;;  %v305_v17 = vld [vmem:[%s1613_s19 + $0x80] sm:$0xff]  ;;  %v306_v18 = vld [vmem:[%s1613_s19 + $0x88] sm:$0xff] }
  0x1a   : > { %243 = vst.msk [vmem:[#allocation2 + $0x40] sm:$0x3] %vm236_vm1, %v1506_v0  ;;  %246 = vst.msk [vmem:[#allocation2 + $0x58] sm:$0x3] %vm236_vm1, %v1506_v0  ;;  %v307_v19 = vld [vmem:[%s1613_s19 + $0x90] sm:$0xff]  ;;  %v308_v20 = vld [vmem:[%s1613_s19 + $0x98] sm:$0xff] }
  0x1b   : > { %249 = vst.msk [vmem:[#allocation2 + $0x70] sm:$0x3] %vm236_vm1, %v1506_v0  ;;  %252 = vst.msk [vmem:[#allocation2 + $0x88] sm:$0x3] %vm236_vm1, %v1506_v0  ;;  %v309_v21 = vld [vmem:[%s1613_s19 + $0xa0] sm:$0xff]  ;;  %v310_v23 = vld [vmem:[%s1613_s19 + $0xa8] sm:$0xff] }
  0x1c   : > { %255 = vst.msk [vmem:[#allocation2 + $0xa0] sm:$0x3] %vm236_vm1, %v1506_v0  ;;  %258 = vst.msk [vmem:[#allocation2 + $0xb8] sm:$0x3] %vm236_vm1, %v1506_v0  ;;  %v311_v24 = vld [vmem:[%s1613_s19 + $0xb0] sm:$0xff]  ;;  %v312_v25 = vld [vmem:[%s1613_s19 + $0xb8] sm:$0xff] }
  0x1d   : > { %261 = vst.msk [vmem:[#allocation2 + $0xd0] sm:$0x3] %vm236_vm1, %v1506_v0  ;;  %264 = vst.msk [vmem:[#allocation2 + $0xe8] sm:$0x3] %vm236_vm1, %v1506_v0  ;;  %v313_v27 = vld [vmem:[%s1613_s19 + $0xc0] sm:$0xff]  ;;  %v314_v28 = vld [vmem:[%s1613_s19 + $0xc8] sm:$0xff] }
  0x1e   : > { %267 = vst.msk [vmem:[#allocation2 + $0x100] sm:$0x3] %vm236_vm1, %v1506_v0  ;;  %270 = vst.msk [vmem:[#allocation2 + $0x118] sm:$0x3] %vm236_vm1, %v1506_v0  ;;  %v315_v29 = vld [vmem:[%s1613_s19 + $0xd0] sm:$0xff]  ;;  %v316_v32 = vld [vmem:[%s1613_s19 + $0xd8] sm:$0xff] }
  0x1f   : > { %273 = vst.msk [vmem:[#allocation2 + $0x130] sm:$0x3] %vm236_vm1, %v1506_v0  ;;  %276 = vst.msk [vmem:[#allocation2 + $0x148] sm:$0x3] %vm236_vm1, %v1506_v0  ;;  %v317_v33 = vld [vmem:[%s1613_s19 + $0xe0] sm:$0xff]  ;;  %v318_v34 = vld [vmem:[%s1613_s19 + $0xe8] sm:$0xff] }
  0x20   : > { %279 = vst.msk [vmem:[#allocation2 + $0x160] sm:$0x3] %vm236_vm1, %v1506_v0  ;;  %282 = vst.msk [vmem:[#allocation2 + $0x178] sm:$0x3] %vm236_vm1, %v1506_v0  ;;  %v319_v35 = vld [vmem:[%s1613_s19 + $0xf0] sm:$0xff]  ;;  %v320_v36 = vld [vmem:[%s1613_s19 + $0xf8] sm:$0xff] }
  0x21   : > { %285 = vst.msk [vmem:[#allocation2 + $0x190] sm:$0x3] %vm236_vm1, %v1506_v0  ;;  %288 = vst.msk [vmem:[#allocation2 + $0x1a8] sm:$0x3] %vm236_vm1, %v1506_v0  ;;  %v464_v55 = vld [vmem:[#allocation2 + $0x9] sm:$0xff] }
  0x22   : > { %322 = vst.msk [vmem:[#allocation2 + $0x19] sm:$0xff] %vm233_vm0, %v289_v1  ;;  %323 = vst.msk [vmem:[#allocation2 + $0x21] sm:$0xff] %vm233_vm0, %v290_v2  ;;  %v565_v56 = vld [vmem:[#allocation2 + $0xa] sm:$0xff]  ;;  %v500_v61 = vmul.f32 %v1668_v26, %v464_v55  ;;  %v431_v2 = vadd.f32 %v1679_v30, %v393_v54 }
  0x23   : > { %324 = vst.msk [vmem:[#allocation2 + $0x31] sm:$0xff] %vm233_vm0, %v291_v3  ;;  %325 = vst.msk [vmem:[#allocation2 + $0x39] sm:$0xff] %vm233_vm0, %v292_v4  ;;  %v1736_v0 = vld [vmem:[%s2320_s1 + $0xa] ss:$0 sm:$0xff]  ;;  %v601_v3 = vmul.f32 %v1684_v31, %v565_v56  ;;  %v632_v4 = vadd.f32 %v600_v48, %v531_v57 }
  0x24   : > { %326 = vst.msk [vmem:[#allocation2 + $0x49] sm:$0xff] %vm233_vm0, %v293_v5  ;;  %327 = vst.msk [vmem:[#allocation2 + $0x51] sm:$0xff] %vm233_vm0, %v294_v6 }
  0x25   : > { %328 = vst.msk [vmem:[#allocation2 + $0x61] sm:$0xff] %vm233_vm0, %v295_v7  ;;  %329 = vst.msk [vmem:[#allocation2 + $0x69] sm:$0xff] %vm233_vm0, %v296_v8 }
  0x26   : > { %330 = vst.msk [vmem:[#allocation2 + $0x79] sm:$0xff] %vm233_vm0, %v297_v9  ;;  %331 = vst.msk [vmem:[#allocation2 + $0x81] sm:$0xff] %vm233_vm0, %v298_v10 }
  0x27   : > { %332 = vst.msk [vmem:[#allocation2 + $0x91] sm:$0xff] %vm233_vm0, %v299_v11  ;;  %333 = vst.msk [vmem:[#allocation2 + $0x99] sm:$0xff] %vm233_vm0, %v300_v12  ;;  %v532_v12 = vadd.f32 %v500_v61, %v431_v2 }
  0x28   : > { %334 = vst.msk [vmem:[#allocation2 + $0xa9] sm:$0xff] %vm233_vm0, %v301_v13  ;;  %335 = vst.msk [vmem:[#allocation2 + $0xb1] sm:$0xff] %vm233_vm0, %v302_v14 }
  0x29   : > { %336 = vst.msk [vmem:[#allocation2 + $0xc1] sm:$0xff] %vm233_vm0, %v303_v15  ;;  %337 = vst.msk [vmem:[#allocation2 + $0xc9] sm:$0xff] %vm233_vm0, %v304_v16  ;;  %v666_v41 = vld [vmem:[#allocation2 + $0x18] sm:$0xff]  ;;  %v667_v62 = vld [vmem:[#allocation2 + $0x20] sm:$0xff] }
  0x2a   : > { %338 = vst.msk [vmem:[#allocation2 + $0xd9] sm:$0xff] %vm233_vm0, %v305_v17  ;;  %339 = vst.msk [vmem:[#allocation2 + $0xe1] sm:$0xff] %vm233_vm0, %v306_v18  ;;  %v394_v46 = vmul.f32 %v1657_v22, %v666_v41  ;;  %v767_v49 = vld [vmem:[#allocation2 + $0x19] sm:$0xff]  ;;  %v702_v58 = vmul.f32 %v1704_v43, %v666_v41  ;;  %v971_v59 = vld [vmem:[#allocation2 + $0x30] sm:$0xff]  ;;  %v703_v13 = vmul.f32 %v1704_v43, %v667_v62 }
  0x2b   : > { %340 = vst.msk [vmem:[#allocation2 + $0xf1] sm:$0xff] %vm233_vm0, %v307_v19  ;;  %341 = vst.msk [vmem:[#allocation2 + $0xf9] sm:$0xff] %vm233_vm0, %v308_v20  ;;  %v868_v53 = vld [vmem:[#allocation2 + $0x1a] sm:$0xff]  ;;  %v1072_v60 = vld [vmem:[#allocation2 + $0x31] sm:$0xff]  ;;  %v803_v5 = vmul.f32 %v1709_v44, %v767_v49  ;;  %v501_v9 = vmul.f32 %v1668_v26, %v767_v49  ;;  %v1007_v10 = vmul.f32 %v1722_v50, %v971_v59 }
  0x2c   : > { %342 = vst.msk [vmem:[#allocation2 + $0x109] sm:$0xff] %vm233_vm0, %v309_v21  ;;  %343 = vst.msk [vmem:[#allocation2 + $0x111] sm:$0xff] %vm233_vm0, %v310_v23  ;;  %v432_v63 = vadd.f32 %v1679_v30, %v394_v46  ;;  %v1738_v1 = vld [vmem:[#allocation2 + $0x32] sm:$0xff]  ;;  %v904_v6 = vmul.f32 %v1714_v45, %v868_v53  ;;  %v768_v7 = vld [vmem:[#allocation2 + $0x21] sm:$0xff]  ;;  %v1108_v11 = vmul.f32 %v1727_v51, %v1072_v60 }
  0x2d   : > { %344 = vst.msk [vmem:[#allocation2 + $0x121] sm:$0xff] %vm233_vm0, %v311_v24  ;;  %345 = vst.msk [vmem:[#allocation2 + $0x129] sm:$0xff] %vm233_vm0, %v312_v25  ;;  %v869_v8 = vld [vmem:[#allocation2 + $0x22] sm:$0xff]  ;;  %v972_v14 = vld [vmem:[#allocation2 + $0x38] sm:$0xff]  ;;  %v734_v15 = vadd.f32 %v702_v58, %v632_v4  ;;  %v1209_v16 = vmul.f32 %v1736_v0, %v1738_v1  ;;  %v602_v19 = vmul.f32 %v1684_v31, %v868_v53 }
  0x2e   : > { %346 = vst.msk [vmem:[#allocation2 + $0x139] sm:$0xff] %vm233_vm0, %v313_v27  ;;  %347 = vst.msk [vmem:[#allocation2 + $0x141] sm:$0xff] %vm233_vm0, %v314_v28  ;;  %v1750_v17 = vld [vmem:[#allocation2 + $0x39] sm:$0xff]  ;;  %v533_v18 = vadd.f32 %v501_v9, %v432_v63  ;;  %v633_v20 = vadd.f32 %v601_v3, %v532_v12  ;;  %v804_v21 = vmul.f32 %v1709_v44, %v768_v7  ;;  %v1769_v42 = vld [vmem:[#allocation2 + $0x49] sm:$0xff] }
  0x2f   : > { %348 = vst.msk [vmem:[#allocation2 + $0x151] sm:$0xff] %vm233_vm0, %v315_v29  ;;  %349 = vst.msk [vmem:[#allocation2 + $0x159] sm:$0xff] %vm233_vm0, %v316_v32  ;;  %v905_v23 = vmul.f32 %v1714_v45, %v869_v8  ;;  %v1755_v24 = vld [vmem:[#allocation2 + $0x3a] sm:$0xff]  ;;  %v395_v25 = vmul.f32 %v1657_v22, %v667_v62  ;;  %v835_v27 = vadd.f32 %v803_v5, %v734_v15  ;;  %v1776_v55 = vld [vmem:[#allocation2 + $0x4a] sm:$0xff] }
  0x30   : > { %350 = vst.msk [vmem:[#allocation2 + $0x169] sm:$0xff] %vm233_vm0, %v317_v33  ;;  %351 = vst.msk [vmem:[#allocation2 + $0x171] sm:$0xff] %vm233_vm0, %v318_v34  ;;  %v1008_v28 = vmul.f32 %v1722_v50, %v972_v14  ;;  %v634_v29 = vadd.f32 %v602_v19, %v533_v18  ;;  %v704_v32 = vmul.f32 %v1704_v43, %v971_v59 }
  0x31   : > { %352 = vst.msk [vmem:[#allocation2 + $0x181] sm:$0xff] %vm233_vm0, %v319_v35  ;;  %353 = vst.msk [vmem:[#allocation2 + $0x189] sm:$0xff] %vm233_vm0, %v320_v36  ;;  %v735_v33 = vadd.f32 %v703_v13, %v633_v20  ;;  %v1109_v34 = vmul.f32 %v1727_v51, %v1750_v17  ;;  %v1762_v35 = vld [vmem:[#allocation2 + $0x48] sm:$0xff]  ;;  %v433_v36 = vadd.f32 %v1679_v30, %v395_v25 }
  0x32   : > { %v502_v37 = vmul.f32 %v1668_v26, %v768_v7  ;;  %v936_v38 = vadd.f32 %v904_v6, %v835_v27  ;;  %v1210_v39 = vmul.f32 %v1736_v0, %v1755_v24  ;;  %v736_v40 = vadd.f32 %v704_v32, %v634_v29  ;;  %v1176_v27 = vld [vmem:[#allocation2 + $0x52] sm:$0xff] }
  0x33   : > { %v805_v41 = vmul.f32 %v1709_v44, %v1072_v60  ;;  %v836_v46 = vadd.f32 %v804_v21, %v735_v33  ;;  %v906_v47 = vmul.f32 %v1714_v45, %v1738_v1  ;;  %v603_v49 = vmul.f32 %v1684_v31, %v869_v8  ;;  %v974_v8 = vld [vmem:[#allocation2 + $0x50] sm:$0xff] }
  0x34   : > { %v534_v48 = vadd.f32 %v502_v37, %v433_v36  ;;  %v1039_v52 = vadd.f32 %v1007_v10, %v936_v38  ;;  %v1009_v54 = vmul.f32 %v1722_v50, %v1762_v35  ;;  %v396_v56 = vmul.f32 %v1657_v22, %v971_v59  ;;  %v1075_v21 = vld [vmem:[#allocation2 + $0x51] sm:$0xff]  ;;  %v1076_v38 = vld [vmem:[#allocation2 + $0x61] sm:$0xff] }
  0x35   : > { %v837_v53 = vadd.f32 %v805_v41, %v736_v40  ;;  %v937_v57 = vadd.f32 %v905_v23, %v836_v46  ;;  %v1110_v58 = vmul.f32 %v1727_v51, %v1769_v42  ;;  %v705_v62 = vmul.f32 %v1704_v43, %v972_v14 }
  0x36   : > { %v635_v61 = vadd.f32 %v603_v49, %v534_v48  ;;  %v1140_v63 = vadd.f32 %v1108_v11, %v1039_v52  ;;  %v434_v3 = vadd.f32 %v1679_v30, %v396_v56  ;;  %v503_v4 = vmul.f32 %v1668_v26, %v1072_v60 }
  0x37   : > { %v938_v2 = vadd.f32 %v906_v47, %v837_v53  ;;  %v1040_v59 = vadd.f32 %v1008_v28, %v937_v57  ;;  %v1211_v5 = vmul.f32 %v1736_v0, %v1776_v55  ;;  %v806_v7 = vmul.f32 %v1709_v44, %v1750_v17  ;;  %v1820_v47 = vld [vmem:[#allocation2 + $0x62] sm:$0xff] }
  0x38   : > { %v737_v6 = vadd.f32 %v705_v62, %v635_v61  ;;  %v1241_v9 = vadd.f32 %v1209_v16, %v1140_v63  ;;  %v535_v11 = vadd.f32 %v503_v4, %v434_v3  ;;  %v604_v60 = vmul.f32 %v1684_v31, %v1738_v1  ;;  %v976_v57 = vld [vmem:[#allocation2 + $0x68] sm:$0xff] }
  0x39   : > { %v1041_v10 = vadd.f32 %v1009_v54, %v938_v2  ;;  %v1141_v12 = vadd.f32 %v1109_v34, %v1040_v59  ;;  %v907_v15 = vmul.f32 %v1714_v45, %v1755_v24  ;;  %v397_v18 = vmul.f32 %v1657_v22, %v972_v14  ;;  %v975_v34 = vld [vmem:[#allocation2 + $0x60] sm:$0xff]  ;;  %v1077_v4 = vld [vmem:[#allocation2 + $0x69] sm:$0xff] }
  0x3a   : > { %v838_v13 = vadd.f32 %v806_v7, %v737_v6  ;;  %1273 = vst.msk [vmem:[%s1789_s20] sm:$0xff] %vm233_vm0, %v1241_v9  ;;  %v1010_v20 = vmul.f32 %v1722_v50, %v974_v8  ;;  %v636_v16 = vadd.f32 %v604_v60, %v535_v11  ;;  %v706_v23 = vmul.f32 %v1704_v43, %v1762_v35  ;;  %v1833_v59 = vld [vmem:[#allocation2 + $0x6a] sm:$0xff] }
  0x3b   : > { %v1142_v19 = vadd.f32 %v1110_v58, %v1041_v10  ;;  %v1242_v1 = vadd.f32 %v1210_v39, %v1141_v12  ;;  %v435_v28 = vadd.f32 %v1679_v30, %v397_v18  ;;  %v504_v14 = vmul.f32 %v1668_v26, %v1750_v17 }
  0x3c   : > { %v939_v25 = vadd.f32 %v907_v15, %v838_v13  ;;  %v738_v32 = vadd.f32 %v706_v23, %v636_v16  ;;  %v807_v33 = vmul.f32 %v1709_v44, %v1769_v42  ;;  %v1111_v37 = vmul.f32 %v1727_v51, %v1075_v21  ;;  %v977_v13 = vld [vmem:[#allocation2 + $0x78] sm:$0xff] }
  0x3d   : > { %v1243_v29 = vadd.f32 %v1211_v5, %v1142_v19  ;;  %1274 = vst.msk [vmem:[%s1789_s20 + $0x8] sm:$0xff] %vm233_vm0, %v1242_v1  ;;  %v536_v39 = vadd.f32 %v504_v14, %v435_v28  ;;  %v605_v40 = vmul.f32 %v1684_v31, %v1755_v24  ;;  %v1212_v17 = vmul.f32 %v1736_v0, %v1176_v27  ;;  %v1078_v16 = vld [vmem:[#allocation2 + $0x79] sm:$0xff] }
  0x3e   : > { %v1042_v36 = vadd.f32 %v1010_v20, %v939_v25  ;;  %v839_v41 = vadd.f32 %v807_v33, %v738_v32  ;;  %v908_v46 = vmul.f32 %v1714_v45, %v1776_v55  ;;  %v398_v48 = vmul.f32 %v1657_v22, %v1762_v35  ;;  %v1849_v25 = vld [vmem:[#allocation2 + $0x7a] sm:$0xff] }
  0x3f   : > { %1275 = vst.msk [vmem:[%s1789_s20 + $0x10] sm:$0xff] %vm233_vm0, %v1243_v29  ;;  %v1011_v52 = vmul.f32 %v1722_v50, %v975_v34  ;;  %v637_v53 = vadd.f32 %v605_v40, %v536_v39  ;;  %v707_v54 = vmul.f32 %v1704_v43, %v974_v8  ;;  %v1112_v56 = vmul.f32 %v1727_v51, %v1076_v38 }
  0x40   : > { %v1143_v49 = vadd.f32 %v1111_v37, %v1042_v36  ;;  %v940_v24 = vadd.f32 %v908_v46, %v839_v41  ;;  %v436_v58 = vadd.f32 %v1679_v30, %v398_v48  ;;  %v505_v61 = vmul.f32 %v1668_v26, %v1769_v42  ;;  %v978_v41 = vld [vmem:[#allocation2 + $0x80] sm:$0xff] }
  0x41   : > { %v1213_v35 = vmul.f32 %v1736_v0, %v1820_v47  ;;  %v739_v63 = vadd.f32 %v707_v54, %v637_v53  ;;  %v808_v2 = vmul.f32 %v1709_v44, %v1075_v21  ;;  %v606_v6 = vmul.f32 %v1684_v31, %v1776_v55  ;;  %v1862_v46 = vld [vmem:[#allocation2 + $0x81] sm:$0xff] }
  0x42   : > { %v1244_v62 = vadd.f32 %v1212_v17, %v1143_v49  ;;  %v1043_v3 = vadd.f32 %v1011_v52, %v940_v24  ;;  %v537_v5 = vadd.f32 %v505_v61, %v436_v58  ;;  %v399_v7 = vmul.f32 %v1657_v22, %v974_v8 }
  0x43   : > { %v840_v42 = vadd.f32 %v808_v2, %v739_v63  ;;  %v909_v9 = vmul.f32 %v1714_v45, %v1176_v27  ;;  %v1012_v10 = vmul.f32 %v1722_v50, %v976_v57  ;;  %v708_v11 = vmul.f32 %v1704_v43, %v975_v34 }
  0x44   : > { %1276 = vst.msk [vmem:[%s1789_s20 + $0x18] sm:$0xff] %vm233_vm0, %v1244_v62  ;;  %v1144_v60 = vadd.f32 %v1112_v56, %v1043_v3  ;;  %v638_v12 = vadd.f32 %v606_v6, %v537_v5  ;;  %v437_v15 = vadd.f32 %v1679_v30, %v399_v7  ;;  %v506_v18 = vmul.f32 %v1668_v26, %v1075_v21  ;;  %v1869_v56 = vld [vmem:[#allocation2 + $0x82] sm:$0xff] }
  0x45   : > { %v941_v55 = vadd.f32 %v909_v9, %v840_v42  ;;  %v1113_v8 = vmul.f32 %v1727_v51, %v1077_v4  ;;  %v1214_v19 = vmul.f32 %v1736_v0, %v1833_v59  ;;  %v809_v20 = vmul.f32 %v1709_v44, %v1076_v38 }
  0x46   : > { %v1245_v23 = vadd.f32 %v1213_v35, %v1144_v60  ;;  %v740_v1 = vadd.f32 %v708_v11, %v638_v12  ;;  %v538_v28 = vadd.f32 %v506_v18, %v437_v15  ;;  %v607_v14 = vmul.f32 %v1684_v31, %v1176_v27  ;;  %v979_v11 = vld [vmem:[#allocation2 + $0x90] sm:$0xff] }
  0x47   : > { %v1044_v29 = vadd.f32 %v1012_v10, %v941_v55  ;;  %v910_v21 = vmul.f32 %v1714_v45, %v1820_v47  ;;  %v1013_v32 = vmul.f32 %v1722_v50, %v977_v13  ;;  %v400_v33 = vmul.f32 %v1657_v22, %v975_v34  ;;  %v1080_v60 = vld [vmem:[#allocation2 + $0x91] sm:$0xff] }
  0x48   : > { %1277 = vst.msk [vmem:[%s1789_s20 + $0x20] sm:$0xff] %vm233_vm0, %v1245_v23  ;;  %v841_v36 = vadd.f32 %v809_v20, %v740_v1  ;;  %v1114_v37 = vmul.f32 %v1727_v51, %v1078_v16  ;;  %v639_v39 = vadd.f32 %v607_v14, %v538_v28  ;;  %v709_v40 = vmul.f32 %v1704_v43, %v976_v57  ;;  %v1181_v23 = vld [vmem:[#allocation2 + $0x92] sm:$0xff] }
  0x49   : > { %v1145_v17 = vadd.f32 %v1113_v8, %v1044_v29  ;;  %v1215_v27 = vmul.f32 %v1736_v0, %v1849_v25  ;;  %v438_v48 = vadd.f32 %v1679_v30, %v400_v33  ;;  %v507_v34 = vmul.f32 %v1668_v26, %v1076_v38 }
  0x4a   : > { %v942_v49 = vadd.f32 %v910_v21, %v841_v36  ;;  %v741_v52 = vadd.f32 %v709_v40, %v639_v39  ;;  %v810_v53 = vmul.f32 %v1709_v44, %v1077_v4  ;;  %v911_v54 = vmul.f32 %v1714_v45, %v1833_v59  ;;  %v980_v36 = vld [vmem:[#allocation2 + $0x98] sm:$0xff] }
  0x4b   : > { %v1246_v24 = vadd.f32 %v1214_v19, %v1145_v17  ;;  %v539_v58 = vadd.f32 %v507_v34, %v438_v48  ;;  %v608_v61 = vmul.f32 %v1684_v31, %v1820_v47  ;;  %v401_v62 = vmul.f32 %v1657_v22, %v976_v57 }
  0x4c   : > { %v1045_v35 = vadd.f32 %v1013_v32, %v942_v49  ;;  %v842_v63 = vadd.f32 %v810_v53, %v741_v52  ;;  %v1014_v38 = vmul.f32 %v1722_v50, %v978_v41  ;;  %v1115_v2 = vmul.f32 %v1727_v51, %v1862_v46  ;;  %v1182_v52 = vld [vmem:[#allocation2 + $0x9a] sm:$0xff] }
  0x4d   : > { %1278 = vst.msk [vmem:[%s1789_s20 + $0x28] sm:$0xff] %vm233_vm0, %v1246_v24  ;;  %v640_v3 = vadd.f32 %v608_v61, %v539_v58  ;;  %v710_v5 = vmul.f32 %v1704_v43, %v977_v13  ;;  %v439_v6 = vadd.f32 %v1679_v30, %v401_v62  ;;  %v508_v7 = vmul.f32 %v1668_v26, %v1077_v4 }
  0x4e   : > { %v1146_v42 = vadd.f32 %v1114_v37, %v1045_v35  ;;  %v943_v47 = vadd.f32 %v911_v54, %v842_v63  ;;  %v1216_v57 = vmul.f32 %v1736_v0, %v1869_v56  ;;  %v811_v9 = vmul.f32 %v1709_v44, %v1078_v16  ;;  %v1081_v37 = vld [vmem:[#allocation2 + $0x99] sm:$0xff] }
  0x4f   : > { %v742_v10 = vadd.f32 %v710_v5, %v640_v3  ;;  %v540_v12 = vadd.f32 %v508_v7, %v439_v6  ;;  %v609_v15 = vmul.f32 %v1684_v31, %v1833_v59  ;;  %v402_v18 = vmul.f32 %v1657_v22, %v977_v13  ;;  %v1082_v3 = vld [vmem:[#allocation2 + $0xa9] sm:$0xff] }
  0x50   : > { %v1247_v55 = vadd.f32 %v1215_v27, %v1146_v42  ;;  %v1046_v8 = vadd.f32 %v1014_v38, %v943_v47  ;;  %v912_v4 = vmul.f32 %v1714_v45, %v1849_v25  ;;  %v711_v19 = vmul.f32 %v1704_v43, %v978_v41 }
  0x51   : > { %v843_v20 = vadd.f32 %v811_v9, %v742_v10  ;;  %v641_v1 = vadd.f32 %v609_v15, %v540_v12  ;;  %v440_v28 = vadd.f32 %v1679_v30, %v402_v18  ;;  %v509_v14 = vmul.f32 %v1668_v26, %v1078_v16  ;;  %v1183_v9 = vld [vmem:[#allocation2 + $0xaa] sm:$0xff] }
  0x52   : > { %1279 = vst.msk [vmem:[%s1789_s20 + $0x30] sm:$0xff] %vm233_vm0, %v1247_v55  ;;  %v1147_v29 = vadd.f32 %v1115_v2, %v1046_v8  ;;  %v1015_v59 = vmul.f32 %v1722_v50, %v979_v11  ;;  %v1116_v13 = vmul.f32 %v1727_v51, %v1080_v60  ;;  %v812_v21 = vmul.f32 %v1709_v44, %v1862_v46  ;;  %v981_v2 = vld [vmem:[#allocation2 + $0xa8] sm:$0xff] }
  0x53   : > { %v944_v32 = vadd.f32 %v912_v4, %v843_v20  ;;  %v743_v33 = vadd.f32 %v711_v19, %v641_v1  ;;  %v541_v39 = vadd.f32 %v509_v14, %v440_v28  ;;  %v610_v40 = vmul.f32 %v1684_v31, %v1849_v25  ;;  %v982_v20 = vld [vmem:[#allocation2 + $0xb0] sm:$0xff] }
  0x54   : > { %v1248_v16 = vadd.f32 %v1216_v57, %v1147_v29  ;;  %v1217_v17 = vmul.f32 %v1736_v0, %v1181_v23  ;;  %v913_v27 = vmul.f32 %v1714_v45, %v1869_v56  ;;  %v403_v48 = vmul.f32 %v1657_v22, %v978_v41 }
  0x55   : > { %v1047_v34 = vadd.f32 %v1015_v59, %v944_v32  ;;  %v844_v49 = vadd.f32 %v812_v21, %v743_v33  ;;  %v642_v53 = vadd.f32 %v610_v40, %v541_v39  ;;  %v712_v54 = vmul.f32 %v1704_v43, %v979_v11  ;;  %v1083_v59 = vld [vmem:[#allocation2 + $0xb1] sm:$0xff] }
  0x56   : > { %1280 = vst.msk [vmem:[%s1789_s20 + $0x38] sm:$0xff] %vm233_vm0, %v1248_v16  ;;  %v1016_v24 = vmul.f32 %v1722_v50, %v980_v36  ;;  %v1117_v25 = vmul.f32 %v1727_v51, %v1081_v37  ;;  %v441_v58 = vadd.f32 %v1679_v30, %v403_v48  ;;  %v510_v61 = vmul.f32 %v1668_v26, %v1862_v46  ;;  %v1184_v33 = vld [vmem:[#allocation2 + $0xb2] sm:$0xff] }
  0x57   : > { %v1148_v62 = vadd.f32 %v1116_v13, %v1047_v34  ;;  %v945_v35 = vadd.f32 %v913_v27, %v844_v49  ;;  %v744_v41 = vadd.f32 %v712_v54, %v642_v53  ;;  %v813_v63 = vmul.f32 %v1709_v44, %v1080_v60  ;;  %v983_v53 = vld [vmem:[#allocation2 + $0xc0] sm:$0xff] }
  0x58   : > { %v1218_v38 = vmul.f32 %v1736_v0, %v1182_v52  ;;  %v542_v5 = vadd.f32 %v510_v61, %v441_v58  ;;  %v611_v6 = vmul.f32 %v1684_v31, %v1869_v56  ;;  %v404_v7 = vmul.f32 %v1657_v22, %v979_v11  ;;  %v1939_v54 = vld [vmem:[#allocation2 + $0xc1] sm:$0xff] }
  0x59   : > { %v1249_v42 = vadd.f32 %v1217_v17, %v1148_v62  ;;  %v1048_v47 = vadd.f32 %v1016_v24, %v945_v35  ;;  %v845_v57 = vadd.f32 %v813_v63, %v744_v41  ;;  %v914_v46 = vmul.f32 %v1714_v45, %v1181_v23  ;;  %v1944_v41 = vld [vmem:[#allocation2 + $0xc2] sm:$0xff] }
  0x5a   : > { %v643_v10 = vadd.f32 %v611_v6, %v542_v5  ;;  %v713_v12 = vmul.f32 %v1704_v43, %v980_v36  ;;  %v442_v15 = vadd.f32 %v1679_v30, %v404_v7  ;;  %v511_v18 = vmul.f32 %v1668_v26, %v1080_v60 }
  0x5b   : > { %1281 = vst.msk [vmem:[%s1789_s20 + $0x40] sm:$0xff] %vm233_vm0, %v1249_v42  ;;  %v1149_v55 = vadd.f32 %v1117_v25, %v1048_v47  ;;  %v946_v8 = vadd.f32 %v914_v46, %v845_v57  ;;  %v1017_v56 = vmul.f32 %v1722_v50, %v981_v2  ;;  %v1118_v11 = vmul.f32 %v1727_v51, %v1082_v3  ;;  %v984_v47 = vld [vmem:[#allocation2 + $0xc8] sm:$0xff] }
  0x5c   : > { %v745_v4 = vadd.f32 %v713_v12, %v643_v10  ;;  %v814_v19 = vmul.f32 %v1709_v44, %v1081_v37  ;;  %v543_v1 = vadd.f32 %v511_v18, %v442_v15  ;;  %v612_v28 = vmul.f32 %v1684_v31, %v1181_v23 }
  0x5d   : > { %v1250_v14 = vadd.f32 %v1218_v38, %v1149_v55  ;;  %v1049_v29 = vadd.f32 %v1017_v56, %v946_v8  ;;  %v1219_v60 = vmul.f32 %v1736_v0, %v1183_v9  ;;  %v405_v13 = vmul.f32 %v1657_v22, %v980_v36  ;;  %v1085_v8 = vld [vmem:[#allocation2 + $0xc9] sm:$0xff] }
  0x5e   : > { %v846_v21 = vadd.f32 %v814_v19, %v745_v4  ;;  %v915_v32 = vmul.f32 %v1714_v45, %v1182_v52  ;;  %v644_v39 = vadd.f32 %v612_v28, %v543_v1  ;;  %v714_v40 = vmul.f32 %v1704_v43, %v981_v2  ;;  %v1959_v56 = vld [vmem:[#allocation2 + $0xca] sm:$0xff] }
  0x5f   : > { %1282 = vst.msk [vmem:[%s1789_s20 + $0x48] sm:$0xff] %vm233_vm0, %v1250_v14  ;;  %v1150_v16 = vadd.f32 %v1118_v11, %v1049_v29  ;;  %v1018_v17 = vmul.f32 %v1722_v50, %v982_v20  ;;  %v443_v23 = vadd.f32 %v1679_v30, %v405_v13  ;;  %v512_v27 = vmul.f32 %v1668_v26, %v1081_v37 }
  0x60   : > { %v947_v48 = vadd.f32 %v915_v32, %v846_v21  ;;  %v1119_v36 = vmul.f32 %v1727_v51, %v1083_v59  ;;  %v746_v34 = vadd.f32 %v714_v40, %v644_v39  ;;  %v815_v49 = vmul.f32 %v1709_v44, %v1082_v3  ;;  %v1086_v40 = vld [vmem:[#allocation2 + $0xd9] sm:$0xff] }
  0x61   : > { %v1251_v24 = vadd.f32 %v1219_v60, %v1150_v16  ;;  %v1220_v25 = vmul.f32 %v1736_v0, %v1184_v33  ;;  %v544_v58 = vadd.f32 %v512_v27, %v443_v23  ;;  %v613_v61 = vmul.f32 %v1684_v31, %v1182_v52  ;;  %v1974_v23 = vld [vmem:[#allocation2 + $0xda] sm:$0xff] }
  0x62   : > { %v1050_v62 = vadd.f32 %v1018_v17, %v947_v48  ;;  %v847_v35 = vadd.f32 %v815_v49, %v746_v34  ;;  %v916_v37 = vmul.f32 %v1714_v45, %v1183_v9  ;;  %v406_v63 = vmul.f32 %v1657_v22, %v981_v2 }
  0x63   : > { %1283 = vst.msk [vmem:[%s1789_s20 + $0x50] sm:$0xff] %vm233_vm0, %v1251_v24  ;;  %v1019_v38 = vmul.f32 %v1722_v50, %v983_v53  ;;  %v1120_v5 = vmul.f32 %v1727_v51, %v1939_v54  ;;  %v645_v6 = vadd.f32 %v613_v61, %v544_v58  ;;  %v715_v7 = vmul.f32 %v1704_v43, %v982_v20 }
  0x64   : > { %v1151_v42 = vadd.f32 %v1119_v36, %v1050_v62  ;;  %v948_v52 = vadd.f32 %v916_v37, %v847_v35  ;;  %v444_v57 = vadd.f32 %v1679_v30, %v406_v63  ;;  %v513_v46 = vmul.f32 %v1668_v26, %v1082_v3  ;;  %v986_v35 = vld [vmem:[#allocation2 + $0xe0] sm:$0xff] }
  0x65   : > { %v1221_v2 = vmul.f32 %v1736_v0, %v1944_v41  ;;  %v747_v10 = vadd.f32 %v715_v7, %v645_v6  ;;  %v816_v12 = vmul.f32 %v1709_v44, %v1083_v59  ;;  %v614_v15 = vmul.f32 %v1684_v31, %v1183_v9  ;;  %v985_v9 = vld [vmem:[#allocation2 + $0xd8] sm:$0xff]  ;;  %v1987_v37 = vld [vmem:[#allocation2 + $0xe1] sm:$0xff] }
  0x66   : > { %v1252_v18 = vadd.f32 %v1220_v25, %v1151_v42  ;;  %v1051_v55 = vadd.f32 %v1019_v38, %v948_v52  ;;  %v545_v11 = vadd.f32 %v513_v46, %v444_v57  ;;  %v407_v4 = vmul.f32 %v1657_v22, %v982_v20  ;;  %v1995_v52 = vld [vmem:[#allocation2 + $0xe2] sm:$0xff] }
  0x67   : > { %v848_v19 = vadd.f32 %v816_v12, %v747_v10  ;;  %v917_v1 = vmul.f32 %v1714_v45, %v1184_v33  ;;  %v1020_v3 = vmul.f32 %v1722_v50, %v984_v47  ;;  %v716_v28 = vmul.f32 %v1704_v43, %v983_v53 }
  0x68   : > { %1284 = vst.msk [vmem:[%s1789_s20 + $0x58] sm:$0xff] %vm233_vm0, %v1252_v18  ;;  %v1152_v14 = vadd.f32 %v1120_v5, %v1051_v55  ;;  %v646_v29 = vadd.f32 %v614_v15, %v545_v11  ;;  %v445_v60 = vadd.f32 %v1679_v30, %v407_v4  ;;  %v514_v13 = vmul.f32 %v1668_v26, %v1083_v59 }
  0x69   : > { %v949_v21 = vadd.f32 %v917_v1, %v848_v19  ;;  %v1121_v20 = vmul.f32 %v1727_v51, %v1085_v8  ;;  %v1222_v32 = vmul.f32 %v1736_v0, %v1959_v56  ;;  %v817_v39 = vmul.f32 %v1709_v44, %v1939_v54 }
  0x6a   : > { %v1253_v16 = vadd.f32 %v1221_v2, %v1152_v14  ;;  %v748_v17 = vadd.f32 %v716_v28, %v646_v29  ;;  %v546_v27 = vadd.f32 %v514_v13, %v445_v60  ;;  %v615_v48 = vmul.f32 %v1684_v31, %v1184_v33  ;;  %v987_v28 = vld [vmem:[#allocation2 + $0xf0] sm:$0xff] }
  0x6b   : > { %v1052_v36 = vadd.f32 %v1020_v3, %v949_v21  ;;  %v918_v59 = vmul.f32 %v1714_v45, %v1944_v41  ;;  %v1021_v34 = vmul.f32 %v1722_v50, %v985_v9  ;;  %v408_v49 = vmul.f32 %v1657_v22, %v983_v53  ;;  %v1088_v14 = vld [vmem:[#allocation2 + $0xf1] sm:$0xff] }
  0x6c   : > { %1285 = vst.msk [vmem:[%s1789_s20 + $0x60] sm:$0xff] %vm233_vm0, %v1253_v16  ;;  %v849_v24 = vadd.f32 %v817_v39, %v748_v17  ;;  %v1122_v25 = vmul.f32 %v1727_v51, %v1086_v40  ;;  %v647_v58 = vadd.f32 %v615_v48, %v546_v27  ;;  %v717_v61 = vmul.f32 %v1704_v43, %v984_v47  ;;  %v1189_v16 = vld [vmem:[#allocation2 + $0xf2] sm:$0xff] }
  0x6d   : > { %v1153_v62 = vadd.f32 %v1121_v20, %v1052_v36  ;;  %v1223_v33 = vmul.f32 %v1736_v0, %v1974_v23  ;;  %v446_v63 = vadd.f32 %v1679_v30, %v408_v49  ;;  %v515_v53 = vmul.f32 %v1668_v26, %v1939_v54 }
  0x6e   : > { %v950_v38 = vadd.f32 %v918_v59, %v849_v24  ;;  %v749_v5 = vadd.f32 %v717_v61, %v647_v58  ;;  %v818_v6 = vmul.f32 %v1709_v44, %v1085_v8  ;;  %v919_v7 = vmul.f32 %v1714_v45, %v1959_v56  ;;  %v988_v24 = vld [vmem:[#allocation2 + $0xf8] sm:$0xff] }
  0x6f   : > { %v1254_v42 = vadd.f32 %v1222_v32, %v1153_v62  ;;  %v547_v57 = vadd.f32 %v515_v53, %v446_v63  ;;  %v616_v46 = vmul.f32 %v1684_v31, %v1944_v41  ;;  %v409_v2 = vmul.f32 %v1657_v22, %v984_v47 }
  0x70   : > { %v1053_v10 = vadd.f32 %v1021_v34, %v950_v38  ;;  %v850_v12 = vadd.f32 %v818_v6, %v749_v5  ;;  %v1022_v54 = vmul.f32 %v1722_v50, %v986_v35  ;;  %v1123_v15 = vmul.f32 %v1727_v51, %v1987_v37  ;;  %v1190_v5 = vld [vmem:[#allocation2 + $0xfa] sm:$0xff] }
  0x71   : > { %1286 = vst.msk [vmem:[%s1789_s20 + $0x68] sm:$0xff] %vm233_vm0, %v1254_v42  ;;  %v648_v18 = vadd.f32 %v616_v46, %v547_v57  ;;  %v718_v55 = vmul.f32 %v1704_v43, %v985_v9  ;;  %v447_v11 = vadd.f32 %v1679_v30, %v409_v2  ;;  %v516_v4 = vmul.f32 %v1668_v26, %v1085_v8 }
  0x72   : > { %v1154_v19 = vadd.f32 %v1122_v25, %v1053_v10  ;;  %v951_v41 = vadd.f32 %v919_v7, %v850_v12  ;;  %v1224_v47 = vmul.f32 %v1736_v0, %v1995_v52  ;;  %v819_v1 = vmul.f32 %v1709_v44, %v1086_v40  ;;  %v1089_v25 = vld [vmem:[#allocation2 + $0xf9] sm:$0xff] }
  0x73   : > { %v750_v3 = vadd.f32 %v718_v55, %v648_v18  ;;  %v548_v29 = vadd.f32 %v516_v4, %v447_v11  ;;  %v617_v60 = vmul.f32 %v1684_v31, %v1959_v56  ;;  %v410_v13 = vmul.f32 %v1657_v22, %v985_v9  ;;  %v1090_v18 = vld [vmem:[#allocation2 + $0x109] sm:$0xff] }
  0x74   : > { %v1255_v21 = vadd.f32 %v1223_v33, %v1154_v19  ;;  %v1054_v20 = vadd.f32 %v1022_v54, %v951_v41  ;;  %v920_v8 = vmul.f32 %v1714_v45, %v1974_v23  ;;  %v719_v32 = vmul.f32 %v1704_v43, %v986_v35 }
  0x75   : > { %v851_v39 = vadd.f32 %v819_v1, %v750_v3  ;;  %v649_v17 = vadd.f32 %v617_v60, %v548_v29  ;;  %v448_v27 = vadd.f32 %v1679_v30, %v410_v13  ;;  %v517_v48 = vmul.f32 %v1668_v26, %v1086_v40  ;;  %v1191_v1 = vld [vmem:[#allocation2 + $0x10a] sm:$0xff] }
  0x76   : > { %1287 = vst.msk [vmem:[%s1789_s20 + $0x70] sm:$0xff] %vm233_vm0, %v1255_v21  ;;  %v1155_v36 = vadd.f32 %v1123_v15, %v1054_v20  ;;  %v1023_v56 = vmul.f32 %v1722_v50, %v987_v28  ;;  %v1124_v9 = vmul.f32 %v1727_v51, %v1088_v14  ;;  %v820_v59 = vmul.f32 %v1709_v44, %v1987_v37  ;;  %v989_v15 = vld [vmem:[#allocation2 + $0x108] sm:$0xff] }
  0x77   : > { %v952_v34 = vadd.f32 %v920_v8, %v851_v39  ;;  %v751_v49 = vadd.f32 %v719_v32, %v649_v17  ;;  %v549_v58 = vadd.f32 %v517_v48, %v448_v27  ;;  %v618_v61 = vmul.f32 %v1684_v31, %v1974_v23  ;;  %v990_v39 = vld [vmem:[#allocation2 + $0x110] sm:$0xff] }
  0x78   : > { %v1256_v40 = vadd.f32 %v1224_v47, %v1155_v36  ;;  %v1225_v62 = vmul.f32 %v1736_v0, %v1189_v16  ;;  %v921_v33 = vmul.f32 %v1714_v45, %v1995_v52  ;;  %v411_v63 = vmul.f32 %v1657_v22, %v986_v35 }
  0x79   : > { %v1055_v53 = vadd.f32 %v1023_v56, %v952_v34  ;;  %v852_v38 = vadd.f32 %v820_v59, %v751_v49  ;;  %v650_v6 = vadd.f32 %v618_v61, %v549_v58  ;;  %v720_v7 = vmul.f32 %v1704_v43, %v987_v28  ;;  %v1091_v56 = vld [vmem:[#allocation2 + $0x111] sm:$0xff] }
  0x7a   : > { %1288 = vst.msk [vmem:[%s1789_s20 + $0x78] sm:$0xff] %vm233_vm0, %v1256_v40  ;;  %v1024_v42 = vmul.f32 %v1722_v50, %v988_v24  ;;  %v1125_v23 = vmul.f32 %v1727_v51, %v1089_v25  ;;  %v449_v57 = vadd.f32 %v1679_v30, %v411_v63  ;;  %v518_v46 = vmul.f32 %v1668_v26, %v1987_v37  ;;  %v2057_v49 = vld [vmem:[#allocation2 + $0x112] sm:$0xff] }
  0x7b   : > { %v1156_v2 = vadd.f32 %v1124_v9, %v1055_v53  ;;  %v953_v10 = vadd.f32 %v921_v33, %v852_v38  ;;  %v752_v35 = vadd.f32 %v720_v7, %v650_v6  ;;  %v821_v12 = vmul.f32 %v1709_v44, %v1088_v14  ;;  %v991_v6 = vld [vmem:[#allocation2 + $0x120] sm:$0xff] }
  0x7c   : > { %v1226_v54 = vmul.f32 %v1736_v0, %v1190_v5  ;;  %v550_v55 = vadd.f32 %v518_v46, %v449_v57  ;;  %v619_v11 = vmul.f32 %v1684_v31, %v1995_v52  ;;  %v412_v4 = vmul.f32 %v1657_v22, %v987_v28  ;;  %v2067_v7 = vld [vmem:[#allocation2 + $0x121] sm:$0xff] }
  0x7d   : > { %v1257_v19 = vadd.f32 %v1225_v62, %v1156_v2  ;;  %v1056_v41 = vadd.f32 %v1024_v42, %v953_v10  ;;  %v853_v47 = vadd.f32 %v821_v12, %v752_v35  ;;  %v922_v37 = vmul.f32 %v1714_v45, %v1189_v16  ;;  %v2073_v35 = vld [vmem:[#allocation2 + $0x122] sm:$0xff] }
  0x7e   : > { %v651_v3 = vadd.f32 %v619_v11, %v550_v55  ;;  %v721_v29 = vmul.f32 %v1704_v43, %v988_v24  ;;  %v450_v60 = vadd.f32 %v1679_v30, %v412_v4  ;;  %v519_v13 = vmul.f32 %v1668_v26, %v1088_v14 }
  0x7f   : > { %1289 = vst.msk [vmem:[%s1789_s20 + $0x80] sm:$0xff] %vm233_vm0, %v1257_v19  ;;  %v1157_v21 = vadd.f32 %v1125_v23, %v1056_v41  ;;  %v954_v20 = vadd.f32 %v922_v37, %v853_v47  ;;  %v1025_v52 = vmul.f32 %v1722_v50, %v989_v15  ;;  %v1126_v28 = vmul.f32 %v1727_v51, %v1090_v18  ;;  %v2082_v41 = vld [vmem:[#allocation2 + $0x128] sm:$0xff] }
  0x80   : > { %v753_v8 = vadd.f32 %v721_v29, %v651_v3  ;;  %v822_v32 = vmul.f32 %v1709_v44, %v1089_v25  ;;  %v551_v17 = vadd.f32 %v519_v13, %v450_v60  ;;  %v620_v27 = vmul.f32 %v1684_v31, %v1189_v16 }
  0x81   : > { %v1258_v48 = vadd.f32 %v1226_v54, %v1157_v21  ;;  %v1057_v36 = vadd.f32 %v1025_v52, %v954_v20  ;;  %v1227_v14 = vmul.f32 %v1736_v0, %v1191_v1  ;;  %v413_v9 = vmul.f32 %v1657_v22, %v988_v24  ;;  %v2090_v21 = vld [vmem:[#allocation2 + $0x129] sm:$0xff] }
  0x82   : > { %v854_v59 = vadd.f32 %v822_v32, %v753_v8  ;;  %v923_v34 = vmul.f32 %v1714_v45, %v1190_v5  ;;  %v652_v58 = vadd.f32 %v620_v27, %v551_v17  ;;  %v722_v61 = vmul.f32 %v1704_v43, %v989_v15  ;;  %v2092_v20 = vld [vmem:[#allocation2 + $0x12a] sm:$0xff]  ;;  %v2107_v17 = vld [vmem:[#allocation2 + $0x138] sm:$0xff]  ;;  %v2112_v27 = vld [vmem:[%s2321_s2] ss:$0 sm:$0xff] }
  0x83   : > { %1290 = vst.msk [vmem:[%s1789_s20 + $0x88] sm:$0xff] %vm233_vm0, %v1258_v48  ;;  %v1158_v40 = vadd.f32 %v1126_v28, %v1057_v36  ;;  %v1026_v16 = vmul.f32 %v1722_v50, %v990_v39  ;;  %v451_v62 = vadd.f32 %v1679_v30, %v413_v9  ;;  %v520_v33 = vmul.f32 %v1668_v26, %v1089_v25  ;;  %v2118_v48 = vld [vmem:[%s2320_s1 + $0x1] ss:$0 sm:$0xff] }
  0x84   : > { %v955_v63 = vadd.f32 %v923_v34, %v854_v59  ;;  %v1127_v24 = vmul.f32 %v1727_v51, %v1091_v56  ;;  %v754_v53 = vadd.f32 %v722_v61, %v652_v58  ;;  %v823_v38 = vmul.f32 %v1709_v44, %v1090_v18  ;;  %v2127_v34 = vld [vmem:[#allocation2 + $0x139] sm:$0xff] }
  0x85   : > { %v1259_v42 = vadd.f32 %v1227_v14, %v1158_v40  ;;  %v1228_v23 = vmul.f32 %v1736_v0, %v2057_v49  ;;  %v552_v57 = vadd.f32 %v520_v33, %v451_v62  ;;  %v621_v46 = vmul.f32 %v1684_v31, %v1190_v5  ;;  %v2129_v40 = vld [vmem:[#allocation2 + $0x13a] sm:$0xff] }
  0x86   : > { %v1058_v2 = vadd.f32 %v1026_v16, %v955_v63  ;;  %v855_v10 = vadd.f32 %v823_v38, %v754_v53  ;;  %v924_v25 = vmul.f32 %v1714_v45, %v1191_v1  ;;  %v414_v12 = vmul.f32 %v1657_v22, %v989_v15 }
  0x87   : > { %1291 = vst.msk [vmem:[%s1789_s20 + $0x90] sm:$0xff] %vm233_vm0, %v1259_v42  ;;  %v1027_v54 = vmul.f32 %v1722_v50, %v991_v6  ;;  %v1128_v55 = vmul.f32 %v1727_v51, %v2067_v7  ;;  %v653_v11 = vadd.f32 %v621_v46, %v552_v57  ;;  %v723_v4 = vmul.f32 %v1704_v43, %v990_v39  ;;  %v2156_v57 = vld [vmem:[#allocation2 + $0x141] sm:$0xff] }
  0x88   : > { %v1159_v19 = vadd.f32 %v1127_v24, %v1058_v2  ;;  %v956_v5 = vadd.f32 %v924_v25, %v855_v10  ;;  %v452_v47 = vadd.f32 %v1679_v30, %v414_v12  ;;  %v521_v37 = vmul.f32 %v1668_v26, %v1090_v18  ;;  %v2097_v26 = vld [vmem:[%s2320_s1] ss:$0 sm:$0xff]  ;;  %v2164_v25 = vld [vmem:[%s2320_s1 + $0x5] ss:$0 sm:$0xff] }
  0x89   : > { %v1229_v22 = vmul.f32 %v1736_v0, %v2073_v35  ;;  %v755_v15 = vadd.f32 %v723_v4, %v653_v11  ;;  %v824_v3 = vmul.f32 %v1709_v44, %v1091_v56  ;;  %v622_v29 = vmul.f32 %v1684_v31, %v1191_v1 }
  0x8a   : > { %v1260_v60 = vadd.f32 %v1228_v23, %v1159_v19  ;;  %v1059_v13 = vadd.f32 %v1027_v54, %v956_v5  ;;  %v553_v52 = vadd.f32 %v521_v37, %v452_v47  ;;  %v415_v30 = vmul.f32 %v2097_v26, %v990_v39  ;;  %v2184_v37 = vld [vmem:[%s2320_s1 + $0x8] ss:$0 sm:$0xff] }
  0x8b   : > { %v856_v18 = vadd.f32 %v824_v3, %v755_v15  ;;  %v925_v28 = vmul.f32 %v1714_v45, %v2057_v49  ;;  %v1028_v31 = vmul.f32 %v1722_v50, %v2082_v41  ;;  %v724_v1 = vmul.f32 %v1704_v43, %v991_v6  ;;  %v2190_v15 = vld [vmem:[%s2320_s1 + $0x9] ss:$0 sm:$0xff] }
  0x8c   : > { %1292 = vst.msk [vmem:[%s1789_s20 + $0x98] sm:$0xff] %vm233_vm0, %v1260_v60  ;;  %v1160_v8 = vadd.f32 %v1128_v55, %v1059_v13  ;;  %v654_v32 = vadd.f32 %v622_v29, %v553_v52  ;;  %v453_v39 = vadd.f32 %v2112_v27, %v415_v30  ;;  %v522_v43 = vmul.f32 %v2118_v48, %v1091_v56  ;;  %v2134_v56 = vld [vmem:[%s2320_s1 + $0x2] ss:$0 sm:$0xff]  ;;  %v2204_v30 = vld [vmem:[%s2320_s1 + $0xa] ss:$0 sm:$0xff] }
  0x8d   : > { %v957_v36 = vadd.f32 %v925_v28, %v856_v18  ;;  %v1129_v14 = vmul.f32 %v1727_v51, %v2090_v21  ;;  %v1230_v9 = vmul.f32 %v1736_v0, %v2092_v20  ;;  %v825_v59 = vmul.f32 %v1709_v44, %v2067_v7  ;;  %v2175_v55 = vld [vmem:[#allocation2 + $0x142] sm:$0xff] }
  0x8e   : > { %v1261_v58 = vadd.f32 %v1229_v22, %v1160_v8  ;;  %v756_v61 = vadd.f32 %v724_v1, %v654_v32  ;;  %v554_v16 = vadd.f32 %v522_v43, %v453_v39  ;;  %v623_v62 = vmul.f32 %v2134_v56, %v2057_v49  ;;  %v2150_v49 = vld [vmem:[%s2320_s1 + $0x4] ss:$0 sm:$0xff]  ;;  %v995_v1 = vld [vmem:[#allocation2 + $0x150] sm:$0xff] }
  0x8f   : > { %v1060_v33 = vadd.f32 %v1028_v31, %v957_v36  ;;  %v926_v63 = vmul.f32 %v1714_v45, %v2073_v35  ;;  %v1029_v44 = vmul.f32 %v1722_v50, %v2107_v17  ;;  %v416_v24 = vmul.f32 %v2097_v26, %v991_v6  ;;  %v994_v6 = vld [vmem:[#allocation2 + $0x140] sm:$0xff]  ;;  %v1096_v8 = vld [vmem:[#allocation2 + $0x151] sm:$0xff] }
  0x90   : > { %1293 = vst.msk [vmem:[%s1789_s20 + $0xa0] sm:$0xff] %vm233_vm0, %v1261_v58  ;;  %v857_v53 = vadd.f32 %v825_v59, %v756_v61  ;;  %v1130_v38 = vmul.f32 %v1727_v51, %v2127_v34  ;;  %v655_v42 = vadd.f32 %v623_v62, %v554_v16  ;;  %v725_v45 = vmul.f32 %v2150_v49, %v2082_v41  ;;  %v1197_v58 = vld [vmem:[#allocation2 + $0x152] sm:$0xff] }
  0x91   : > { %v1161_v23 = vadd.f32 %v1129_v14, %v1060_v33  ;;  %v1231_v50 = vmul.f32 %v1736_v0, %v2129_v40  ;;  %v454_v46 = vadd.f32 %v2112_v27, %v416_v24  ;;  %v523_v51 = vmul.f32 %v2118_v48, %v2067_v7  ;;  %v2171_v0 = vld [vmem:[%s2320_s1 + $0x6] ss:$0 sm:$0xff] }
  0x92   : > { %v958_v2 = vadd.f32 %v926_v63, %v857_v53  ;;  %v757_v10 = vadd.f32 %v725_v45, %v655_v42  ;;  %v826_v12 = vmul.f32 %v2164_v25, %v2090_v21  ;;  %v927_v54 = vmul.f32 %v2171_v0, %v2092_v20  ;;  %v996_v53 = vld [vmem:[#allocation2 + $0x158] sm:$0xff] }
  0x93   : > { %v1262_v7 = vadd.f32 %v1230_v9, %v1161_v23  ;;  %v555_v11 = vadd.f32 %v523_v51, %v454_v46  ;;  %v624_v4 = vmul.f32 %v2134_v56, %v2073_v35  ;;  %v417_v19 = vmul.f32 %v2097_v26, %v2082_v41 }
  0x94   : > { %v1061_v5 = vadd.f32 %v1029_v44, %v958_v2  ;;  %v858_v47 = vadd.f32 %v826_v12, %v757_v10  ;;  %v1030_v22 = vmul.f32 %v2184_v37, %v994_v6  ;;  %v1131_v35 = vmul.f32 %v2190_v15, %v2156_v57  ;;  %v1198_v10 = vld [vmem:[#allocation2 + $0x15a] sm:$0xff] }
  0x95   : > { %1294 = vst.msk [vmem:[%s1789_s20 + $0xa8] sm:$0xff] %vm233_vm0, %v1262_v7  ;;  %v656_v41 = vadd.f32 %v624_v4, %v555_v11  ;;  %v726_v3 = vmul.f32 %v2150_v49, %v2107_v17  ;;  %v455_v29 = vadd.f32 %v2112_v27, %v417_v19  ;;  %v524_v60 = vmul.f32 %v2118_v48, %v2090_v21 }
  0x96   : > { %v1162_v13 = vadd.f32 %v1130_v38, %v1061_v5  ;;  %v959_v52 = vadd.f32 %v927_v54, %v858_v47  ;;  %v1232_v18 = vmul.f32 %v2204_v30, %v2175_v55  ;;  %v827_v28 = vmul.f32 %v2164_v25, %v2127_v34  ;;  %v1097_v38 = vld [vmem:[#allocation2 + $0x159] sm:$0xff] }
  0x97   : > { %v758_v31 = vadd.f32 %v726_v3, %v656_v41  ;;  %v556_v32 = vadd.f32 %v524_v60, %v455_v29  ;;  %v625_v21 = vmul.f32 %v2134_v56, %v2092_v20  ;;  %v418_v39 = vmul.f32 %v2097_v26, %v2107_v17  ;;  %v1098_v41 = vld [vmem:[#allocation2 + $0x169] sm:$0xff] }
  0x98   : > { %v1263_v43 = vadd.f32 %v1231_v50, %v1162_v13  ;;  %v1062_v36 = vadd.f32 %v1030_v22, %v959_v52  ;;  %v928_v14 = vmul.f32 %v2171_v0, %v2129_v40  ;;  %v727_v9 = vmul.f32 %v2150_v49, %v994_v6 }
  0x99   : > { %v859_v59 = vadd.f32 %v827_v28, %v758_v31  ;;  %v657_v61 = vadd.f32 %v625_v21, %v556_v32  ;;  %v456_v16 = vadd.f32 %v2112_v27, %v418_v39  ;;  %v525_v62 = vmul.f32 %v2118_v48, %v2127_v34  ;;  %v1199_v28 = vld [vmem:[#allocation2 + $0x16a] sm:$0xff] }
  0x9a   : > { %1295 = vst.msk [vmem:[%s1789_s20 + $0xb0] sm:$0xff] %vm233_vm0, %v1263_v43  ;;  %v1163_v20 = vadd.f32 %v1131_v35, %v1062_v36  ;;  %v1031_v17 = vmul.f32 %v2184_v37, %v995_v1  ;;  %v1132_v33 = vmul.f32 %v2190_v15, %v1096_v8  ;;  %v828_v63 = vmul.f32 %v2164_v25, %v2156_v57  ;;  %v997_v35 = vld [vmem:[#allocation2 + $0x168] sm:$0xff] }
  0x9b   : > { %v960_v44 = vadd.f32 %v928_v14, %v859_v59  ;;  %v759_v24 = vadd.f32 %v727_v9, %v657_v61  ;;  %v557_v42 = vadd.f32 %v525_v62, %v456_v16  ;;  %v626_v45 = vmul.f32 %v2134_v56, %v2129_v40  ;;  %v998_v59 = vld [vmem:[#allocation2 + $0x170] sm:$0xff] }
  0x9c   : > { %v1264_v34 = vadd.f32 %v1232_v18, %v1163_v20  ;;  %v1233_v23 = vmul.f32 %v2204_v30, %v1197_v58  ;;  %v929_v50 = vmul.f32 %v2171_v0, %v2175_v55  ;;  %v419_v46 = vmul.f32 %v2097_v26, %v994_v6 }
  0x9d   : > { %v1063_v51 = vadd.f32 %v1031_v17, %v960_v44  ;;  %v860_v2 = vadd.f32 %v828_v63, %v759_v24  ;;  %v658_v12 = vadd.f32 %v626_v45, %v557_v42  ;;  %v728_v54 = vmul.f32 %v2150_v49, %v995_v1  ;;  %v1099_v17 = vld [vmem:[#allocation2 + $0x171] sm:$0xff] }
  0x9e   : > { %1296 = vst.msk [vmem:[%s1789_s20 + $0xb8] sm:$0xff] %vm233_vm0, %v1264_v34  ;;  %v1032_v7 = vmul.f32 %v2184_v37, %v996_v53  ;;  %v1133_v40 = vmul.f32 %v2190_v15, %v1097_v38  ;;  %v457_v11 = vadd.f32 %v2112_v27, %v419_v46  ;;  %v526_v4 = vmul.f32 %v2118_v48, %v2156_v57  ;;  %v1200_v24 = vld [vmem:[#allocation2 + $0x172] sm:$0xff] }
  0x9f   : > { %v1164_v19 = vadd.f32 %v1132_v33, %v1063_v51  ;;  %v961_v5 = vadd.f32 %v929_v50, %v860_v2  ;;  %v760_v6 = vadd.f32 %v728_v54, %v658_v12  ;;  %v829_v47 = vmul.f32 %v2164_v25, %v1096_v8  ;;  %v999_v12 = vld [vmem:[#allocation2 + $0x180] sm:$0xff] }
  0xa0   : > { %v1234_v22 = vmul.f32 %v2204_v30, %v1198_v10  ;;  %v558_v3 = vadd.f32 %v526_v4, %v457_v11  ;;  %v627_v29 = vmul.f32 %v2134_v56, %v2175_v55  ;;  %v420_v60 = vmul.f32 %v2097_v26, %v995_v1  ;;  %v1100_v54 = vld [vmem:[#allocation2 + $0x181] sm:$0xff] }
  0xa1   : > { %v1265_v13 = vadd.f32 %v1233_v23, %v1164_v19  ;;  %v1064_v52 = vadd.f32 %v1032_v7, %v961_v5  ;;  %v861_v18 = vadd.f32 %v829_v47, %v760_v6  ;;  %v930_v57 = vmul.f32 %v2171_v0, %v1197_v58 }
  0xa2   : > { %v659_v31 = vadd.f32 %v627_v29, %v558_v3  ;;  %v729_v32 = vmul.f32 %v2150_v49, %v996_v53  ;;  %v458_v21 = vadd.f32 %v2112_v27, %v420_v60  ;;  %v527_v39 = vmul.f32 %v2118_v48, %v1096_v8 }
  0xa3   : > { %1297 = vst.msk [vmem:[%s1789_s20 + $0xc0] sm:$0xff] %vm233_vm0, %v1265_v13  ;;  %v1165_v43 = vadd.f32 %v1133_v40, %v1064_v52  ;;  %v962_v36 = vadd.f32 %v930_v57, %v861_v18  ;;  %v1033_v55 = vmul.f32 %v2184_v37, %v997_v35  ;;  %v1134_v1 = vmul.f32 %v2190_v15, %v1098_v41  ;;  %v1201_v52 = vld [vmem:[#allocation2 + $0x182] sm:$0xff] }
  0xa4   : > { %v761_v14 = vadd.f32 %v729_v32, %v659_v31  ;;  %v830_v9 = vmul.f32 %v2164_v25, %v1097_v38  ;;  %v559_v61 = vadd.f32 %v527_v39, %v458_v21  ;;  %v628_v16 = vmul.f32 %v2134_v56, %v1197_v58 }
  0xa5   : > { %v1266_v62 = vadd.f32 %v1234_v22, %v1165_v43  ;;  %v1065_v20 = vadd.f32 %v1033_v55, %v962_v36  ;;  %v1235_v8 = vmul.f32 %v2204_v30, %v1199_v28  ;;  %v421_v33 = vmul.f32 %v2097_v26, %v996_v53  ;;  %v1000_v43 = vld [vmem:[#allocation2 + $0x188] sm:$0xff] }
  0xa6   : > { %v862_v63 = vadd.f32 %v830_v9, %v761_v14  ;;  %v931_v44 = vmul.f32 %v2171_v0, %v1198_v10  ;;  %v660_v42 = vadd.f32 %v628_v16, %v559_v61  ;;  %v730_v45 = vmul.f32 %v2150_v49, %v997_v35  ;;  %v1101_v61 = vld [vmem:[#allocation2 + $0x189] sm:$0xff] }
  0xa7   : > { %1298 = vst.msk [vmem:[%s1789_s20 + $0xc8] sm:$0xff] %vm233_vm0, %v1266_v62  ;;  %v1166_v34 = vadd.f32 %v1134_v1, %v1065_v20  ;;  %v1034_v23 = vmul.f32 %v2184_v37, %v998_v59  ;;  %v459_v58 = vadd.f32 %v2112_v27, %v421_v33  ;;  %v528_v50 = vmul.f32 %v2118_v48, %v1097_v38 }
  0xa8   : > { %v963_v46 = vadd.f32 %v931_v44, %v862_v63  ;;  %v1135_v53 = vmul.f32 %v2190_v15, %v1099_v17  ;;  %v762_v51 = vadd.f32 %v730_v45, %v660_v42  ;;  %v831_v2 = vmul.f32 %v2164_v25, %v1098_v41  ;;  %v1202_v44 = vld [vmem:[#allocation2 + $0x18a] sm:$0xff] }
  0xa9   : > { %v1267_v7 = vadd.f32 %v1235_v8, %v1166_v34  ;;  %v1236_v40 = vmul.f32 %v2204_v30, %v1200_v24  ;;  %v560_v11 = vadd.f32 %v528_v50, %v459_v58  ;;  %v629_v4 = vmul.f32 %v2134_v56, %v1198_v10  ;;  %v1102_v50 = vld [vmem:[#allocation2 + $0x199] sm:$0xff] }
  0xaa   : > { %v1066_v19 = vadd.f32 %v1034_v23, %v963_v46  ;;  %v863_v5 = vadd.f32 %v831_v2, %v762_v51  ;;  %v932_v6 = vmul.f32 %v2171_v0, %v1199_v28  ;;  %v422_v38 = vmul.f32 %v2097_v26, %v997_v35 }
  0xab   : > { %1299 = vst.msk [vmem:[%s1789_s20 + $0xd0] sm:$0xff] %vm233_vm0, %v1267_v7  ;;  %v1035_v47 = vmul.f32 %v2184_v37, %v999_v12  ;;  %v1136_v22 = vmul.f32 %v2190_v15, %v1100_v54  ;;  %v661_v3 = vadd.f32 %v629_v4, %v560_v11  ;;  %v731_v29 = vmul.f32 %v2150_v49, %v998_v59  ;;  %v1203_v7 = vld [vmem:[#allocation2 + $0x19a] sm:$0xff] }
  0xac   : > { %v1167_v60 = vadd.f32 %v1135_v53, %v1066_v19  ;;  %v964_v13 = vadd.f32 %v932_v6, %v863_v5  ;;  %v460_v10 = vadd.f32 %v2112_v27, %v422_v38  ;;  %v529_v18 = vmul.f32 %v2118_v48, %v1098_v41  ;;  %v1002_v53 = vld [vmem:[#allocation2 + $0x1a0] sm:$0xff] }
  0xad   : > { %v763_v57 = vadd.f32 %v731_v29, %v661_v3  ;;  %v832_v35 = vmul.f32 %v2164_v25, %v1099_v17  ;;  %v630_v31 = vmul.f32 %v2134_v56, %v1199_v28  ;;  %v732_v32 = vmul.f32 %v2150_v49, %v999_v12  ;;  %v1103_v5 = vld [vmem:[#allocation2 + $0x1a1] sm:$0xff] }
  0xae   : > { %v1268_v21 = vadd.f32 %v1236_v40, %v1167_v60  ;;  %v1067_v39 = vadd.f32 %v1035_v47, %v964_v13  ;;  %v561_v36 = vadd.f32 %v529_v18, %v460_v10  ;;  %v423_v55 = vmul.f32 %v2097_v26, %v998_v59  ;;  %v1001_v59 = vld [vmem:[#allocation2 + $0x198] sm:$0xff] }
  0xaf   : > { %v1237_v1 = vmul.f32 %v2204_v30, %v1201_v52  ;;  %v864_v14 = vadd.f32 %v832_v35, %v763_v57  ;;  %v933_v9 = vmul.f32 %v2171_v0, %v1200_v24  ;;  %v530_v62 = vmul.f32 %v2118_v48, %v1099_v17 }
  0xb0   : > { %1300 = vst.msk [vmem:[%s1789_s20 + $0xd8] sm:$0xff] %vm233_vm0, %v1268_v21  ;;  %v1168_v41 = vadd.f32 %v1136_v22, %v1067_v39  ;;  %v662_v16 = vadd.f32 %v630_v31, %v561_v36  ;;  %v461_v28 = vadd.f32 %v2112_v27, %v423_v55  ;;  %v1036_v8 = vmul.f32 %v2184_v37, %v1000_v43 }
  0xb1   : > { %v965_v20 = vadd.f32 %v933_v9, %v864_v14  ;;  %v833_v26 = vmul.f32 %v2164_v25, %v1100_v54  ;;  %v631_v33 = vmul.f32 %v2134_v56, %v1200_v24  ;;  %v733_v34 = vmul.f32 %v2150_v49, %v1000_v43 }
  0xb2   : > { %v1269_v63 = vadd.f32 %v1237_v1, %v1168_v41  ;;  %v764_v42 = vadd.f32 %v732_v32, %v662_v16  ;;  %v562_v45 = vadd.f32 %v530_v62, %v461_v28  ;;  %v1137_v58 = vmul.f32 %v2190_v15, %v1101_v61 }
  0xb3   : > { %v1068_v23 = vadd.f32 %v1036_v8, %v965_v20  ;;  %v934_v48 = vmul.f32 %v2171_v0, %v1201_v52  ;;  %v1037_v17 = vmul.f32 %v2184_v37, %v1001_v59  ;;  %v1238_v24 = vmul.f32 %v2204_v30, %v1202_v44 }
  0xb4   : > { %1301 = vst.msk [vmem:[%s1789_s20 + $0xe0] sm:$0xff] %vm233_vm0, %v1269_v63  ;;  %v865_v27 = vadd.f32 %v833_v26, %v764_v42  ;;  %v663_v46 = vadd.f32 %v631_v33, %v562_v45  ;;  %v834_v49 = vmul.f32 %v2164_v25, %v1101_v61  ;;  %v1138_v54 = vmul.f32 %v2190_v15, %v1102_v50  ;;  %v1204_v25 = vld [vmem:[#allocation2 + $0x1a2] sm:$0xff] }
  0xb5   : > { %v1169_v56 = vadd.f32 %v1137_v58, %v1068_v23  ;;  %v935_v4 = vmul.f32 %v2171_v0, %v1202_v44  ;;  %v1038_v19 = vmul.f32 %v2184_v37, %v1002_v53  ;;  %v1239_v38 = vmul.f32 %v2204_v30, %v1203_v7 }
  0xb6   : > { %v966_v51 = vadd.f32 %v934_v48, %v865_v27  ;;  %v765_v2 = vadd.f32 %v733_v34, %v663_v46  ;;  %v1139_v29 = vmul.f32 %v2190_v15, %v1103_v5  ;;  %v1240_v13 = vmul.f32 %v2204_v30, %v1204_v25 }
  0xb7   : > { %v1270_v12 = vadd.f32 %v1238_v24, %v1169_v56 }
  0xb8   : > { %v1069_v40 = vadd.f32 %v1037_v17, %v966_v51  ;;  %v866_v11 = vadd.f32 %v834_v49, %v765_v2 }
  0xb9   : > { %1302 = vst.msk [vmem:[%s1789_s20 + $0xe8] sm:$0xff] %vm233_vm0, %v1270_v12 }
  0xba   : > { %v1170_v6 = vadd.f32 %v1138_v54, %v1069_v40  ;;  %v967_v47 = vadd.f32 %v935_v4, %v866_v11 }
  0xbc   : > { %v1271_v22 = vadd.f32 %v1239_v38, %v1170_v6  ;;  %v1070_v3 = vadd.f32 %v1038_v19, %v967_v47 }
  0xbe   : > { %1303 = vst.msk [vmem:[%s1789_s20 + $0xf0] sm:$0xff] %vm233_vm0, %v1271_v22  ;;  %v1171_v60 = vadd.f32 %v1139_v29, %v1070_v3 }
  0xc0   : > { %v1272_v0 = vadd.f32 %v1240_v13, %v1171_v60 }
  0xc2   : > { %1304 = vst.msk [vmem:[%s1789_s20 + $0xf8] sm:$0xff] %vm233_vm0, %v1272_v0 }
  0xc3 PF: > { %s13_s14 = sadd.s32 1, %s1504_s14   ;;  %s2323_s12 = smov %s1500_s13 }
  0xc4   : > { %p10_p5 = scmp.ge.s32.totalorder %s13_s14, 4   ;;  %s2324_s13 = smov %s2326_s15 }
  0xc6   :  { %12 = sbr.rel (!%p10_p5) target bundleno = 2 (0x2), region = 72 }

</bundles_post_ra>
